<compile_context>
chip_gen: v5e
topology: v5e:2x2
jax: 0.10.0
libtpu: 0.0.40
codegen_flags: <defaults>
</compile_context>

<pallas_src>
import functools

import jax
import jax.numpy as jnp
from jax import lax
from jax.experimental import pallas as pl
from jax.experimental.pallas import tpu as pltpu

BN_EPS = 1e-5
_HALO = 8                         # sublane-aligned halo; >= max supported dilation
_VMEM_LIMIT = 32 * 1024 * 1024


# --------------------------------------------------------------------------
# Fused aspp_unit kernel (one batch element per grid step)
# --------------------------------------------------------------------------
def _aspp_unit_kernel(x_ref, w_ref, s_ref, b_ref, mix_ref, o_ref, pad_ref,
                      *, H, W, d, strip):
    # x_ref:(H,W,C) f32   w_ref:(9,C) f32   s/b:(1,C) f32   mix:(C,C) bf16 {0,1}
    # o_ref:(H*W,C) f32   pad_ref:(H+2P, W+2P, C) f32 VMEM scratch
    C = x_ref.shape[-1]
    P = _HALO
    W2 = W + 2 * P

    # ---- halo: zero only the d-wide frame the taps read (every grid step) ----
    zrow = jnp.zeros((d, W2, C), jnp.float32)
    pad_ref[P - d:P, :, :] = zrow                     # top band (covers corners)
    pad_ref[P + H:P + H + d, :, :] = zrow             # bottom band
    zcol = jnp.zeros((H, d, C), jnp.float32)
    pad_ref[P:P + H, P - d:P, :] = zcol               # left band
    pad_ref[P:P + H, P + W:P + W + d, :] = zcol       # right band
    # interior: one sublane-aligned store (offset P = 8)
    pad_ref[P:P + H, P:P + W, :] = x_ref[...].astype(jnp.float32)

    w = w_ref[...]                                    # (9, C)
    scale = s_ref[...].reshape(1, 1, C)
    bias = b_ref[...].reshape(1, 1, C)
    mix = mix_ref[...]                                # (C, C) bf16, entries {0,1}

    # ---- depthwise 3x3 dilated conv + fused BN, strip-mined over H ----------
    for h0 in range(0, H, strip):
        acc = jnp.zeros((strip, W, C), jnp.float32)
        for ky in range(3):
            oy = P + h0 + (ky - 1) * d
            for kx in range(3):
                ox = P + (kx - 1) * d
                tap = pad_ref[oy:oy + strip, ox:ox + W, :]
                wk = w[ky * 3 + kx:ky * 3 + kx + 1, :].reshape(1, 1, C)
                acc = acc + tap * wk
        acc = acc * scale + bias

        # channelShuffle(4) + AvgPool3d((3,1,1)) == (row @ mix01) * (1/3)
        y = acc.reshape(strip * W, C).astype(jnp.bfloat16)
        mixed = jnp.dot(y, mix, preferred_element_type=jnp.float32) * (1.0 / 3.0)
        o_ref[h0 * W:(h0 + strip) * W, :] = mixed.astype(o_ref.dtype)


def aspp_unit_forward(x_nchw, params, *, dilation=1):
    """aspp_unit forward.  x_nchw: (B, 128, H, W) f32 -> (B, 128, H, W) f32."""
    B, C, H, W = x_nchw.shape
    assert C == 128, "aspp_unit expects 128 channels (chunk(2) -> 64-ch depthwise)"
    assert dilation <= _HALO
    assert H % 8 == 0 and W % 8 == 0      # sublane alignment / layout-no-op reshape
    strip = 8

    x = jnp.transpose(x_nchw, (0, 2, 3, 1))          # NHWC, f32 (taps run in f32)

    out = pl.pallas_call(
        functools.partial(_aspp_unit_kernel, H=H, W=W, d=dilation, strip=strip),
        out_shape=jax.ShapeDtypeStruct((B, H * W, C), jnp.float32),
        grid_spec=pltpu.PrefetchScalarGridSpec(
            num_scalar_prefetch=0,
            grid=(B,),
            in_specs=[
                pl.BlockSpec((None, H, W, C), lambda b: (b, 0, 0, 0)),
                pl.BlockSpec((9, C), lambda b: (0, 0)),
                pl.BlockSpec((1, C), lambda b: (0, 0)),
                pl.BlockSpec((1, C), lambda b: (0, 0)),
                pl.BlockSpec((C, C), lambda b: (0, 0)),
            ],
            out_specs=pl.BlockSpec((None, H * W, C), lambda b: (b, 0, 0)),
            scratch_shapes=[
                pltpu.VMEM((H + 2 * _HALO, W + 2 * _HALO, C), jnp.float32)],
        ),
        compiler_params=pltpu.CompilerParams(
            dimension_semantics=("parallel",),        # batch axis -> both v7x TCs
            vmem_limit_bytes=_VMEM_LIMIT),
    )(x, params["dw_w"], params["dw_scale"], params["dw_bias"], params["mix"])

    out = out.reshape(B, H, W, C)
    return jnp.transpose(out, (0, 3, 1, 2))           # back to NCHW


# --------------------------------------------------------------------------
# Constant mixing matrix: channelShuffle(4) followed by 3-wide channel adjacency.
# Entries are exactly {0, 1} -> exact in bf16; the 1/3 divisor stays in f32.
# --------------------------------------------------------------------------
def _make_mix01(C=128, groups=4):
    idx = jnp.arange(C)
    perm = (idx % groups) * (C // groups) + idx // groups      # shuf[k] = y[perm[k]]
    shuffle = (idx[:, None] == perm[None, :]).astype(jnp.float32)   # y @ S = shuf
    adj = (jnp.abs(idx[:, None] - idx[None, :]) <= 1).astype(jnp.float32)
    return (shuffle @ adj).astype(jnp.bfloat16)                # {0,1}, exact in bf16


# --------------------------------------------------------------------------
# Deterministic parameter init (shapes from aspp_unit.__init__) + BN fusion.
# --------------------------------------------------------------------------
def init_params(key):
    k_w, k_b, k_g, k_be = jax.random.split(key, 4)
    dw_w = jax.random.normal(k_w, (3, 3, 64), jnp.float32) * 0.05   # torch (64,1,3,3)
    dw_b = jax.random.normal(k_b, (64,), jnp.float32) * 0.05
    gamma = 1.0 + jax.random.normal(k_g, (64,), jnp.float32) * 0.05
    beta = jax.random.normal(k_be, (64,), jnp.float32) * 0.05
    mean = jnp.zeros((64,), jnp.float32)           # inference-mode running stats
    var = jnp.ones((64,), jnp.float32)

    raw = {"dw_w": dw_w, "dw_b": dw_b, "gamma": gamma, "beta": beta,
           "mean": mean, "var": var}

    # fuse conv bias + BatchNorm into per-channel scale / bias
    scale = gamma / jnp.sqrt(var + BN_EPS)
    bias = scale * (dw_b - mean) + beta

    # widen to 128 lanes: channels 0..63 (untouched chunk) -> identity taps
    ident = jnp.zeros((9, 64), jnp.float32).at[4, :].set(1.0)
    w9 = jnp.concatenate([ident, dw_w.reshape(9, 64)], axis=1)             # (9,128)
    scale128 = jnp.concatenate([jnp.ones((64,), jnp.float32), scale]).reshape(1, 128)
    bias128 = jnp.concatenate([jnp.zeros((64,), jnp.float32), bias]).reshape(1, 128)

    params = {"dw_w": w9, "dw_scale": scale128, "dw_bias": bias128,
              "mix": _make_mix01(128, 4)}
    return params, raw


# --------------------------------------------------------------------------
# Pure-JAX reference (mirrors the PyTorch module) for correctness checking.
# --------------------------------------------------------------------------
def reference_aspp_unit(x_nchw, raw, *, dilation=1):
    x1, x2 = x_nchw[:, :64], x_nchw[:, 64:]
    w_oihw = jnp.transpose(raw["dw_w"], (2, 0, 1))[:, None, :, :]     # (64,1,3,3)
    y = lax.conv_general_dilated(
        x2, w_oihw, window_strides=(1, 1),
        padding=[(dilation, dilation), (dilation, dilation)],
        rhs_dilation=(dilation, dilation),
        dimension_numbers=("NCHW", "OIHW", "NCHW"),
        feature_group_count=64)
    y = y + raw["dw_b"][None, :, None, None]
    scale = raw["gamma"] / jnp.sqrt(raw["var"] + BN_EPS)
    y = (y - raw["mean"][None, :, None, None]) * scale[None, :, None, None] \
        + raw["beta"][None, :, None, None]
    x = jnp.concatenate([x1, y], axis=1)
    B, C, H, W = x.shape
    x = x.reshape(B, 4, C // 4, H, W).transpose(0, 2, 1, 3, 4).reshape(B, C, H, W)
    xp = jnp.pad(x, ((0, 0), (1, 1), (0, 0), (0, 0)))     # AvgPool3d (3,1,1), pad 1
    return (xp[:, :-2] + xp[:, 1:-1] + xp[:, 2:]) / 3.0   # count_include_pad divisor 3


if __name__ == "__main__":
    key = jax.random.PRNGKey(0)
    kp, kx = jax.random.split(key)

    # shape implied by the module: chunk(2) feeding a 64-channel depthwise => C=128
    x = jax.random.normal(kx, (2, 128, 16, 16), jnp.float32)   # NCHW

    # constructor default dilation=1 plus the largest dilation used by MyASPP (5)
    for d in (1, 5):
        params, raw = init_params(jax.random.fold_in(kp, d))
        fwd = jax.jit(functools.partial(aspp_unit_forward, dilation=d))
        out = jax.block_until_ready(fwd(x, params))
        assert out.shape == (2, 128, 16, 16), out.shape
        assert bool(jnp.all(jnp.isfinite(out)))
        ref = reference_aspp_unit(x, raw, dilation=d)
        err = float(jnp.max(jnp.abs(out - ref)))
        # only bf16 step is the mix-matmul LHS cast -> tiny drift
        assert err < 1e-1, f"dilation={d}: max abs err {err}"

    print("KERNEL_OK")
</pallas_src>

<mosaic_0001>
module attributes {stable_mosaic.version = 11 : i64} {
  func.func @_aspp_unit_kernel(%arg0: i32, %arg1: memref<1x16x16x128xf32, #tpu.memory_space<vmem>>, %arg2: memref<9x128xf32, #tpu.memory_space<vmem>>, %arg3: memref<1x128xf32, #tpu.memory_space<vmem>>, %arg4: memref<1x128xf32, #tpu.memory_space<vmem>>, %arg5: memref<128x128xbf16, #tpu.memory_space<vmem>>, %arg6: memref<1x256x128xf32, #tpu.memory_space<vmem>>, %arg7: memref<32x32x128xf32, #tpu.memory_space<vmem>>) attributes {dimension_semantics = [#tpu.dimension_semantics<parallel>], iteration_bounds = array<i64: 2>, scalar_prefetch = 0 : i64, scratch_operands = 1 : i64, tpu.core_type = #tpu.core_type<tc>, window_params = [{transform_indices = @transform_0, window_bounds = array<i64: 1, 16, 16, 128>}, {pipeline_mode = #tpu.pipeline_mode<synchronous>, transform_indices = @transform_1, window_bounds = array<i64: 9, 128>}, {pipeline_mode = #tpu.pipeline_mode<synchronous>, transform_indices = @transform_2, window_bounds = array<i64: 1, 128>}, {pipeline_mode = #tpu.pipeline_mode<synchronous>, transform_indices = @transform_3, window_bounds = array<i64: 1, 128>}, {pipeline_mode = #tpu.pipeline_mode<synchronous>, transform_indices = @transform_4, window_bounds = array<i64: 128, 128>}, {transform_indices = @transform_5, window_bounds = array<i64: 1, 256, 128>}]} {
    %cst = arith.constant 0.000000e+00 : f32
    %0 = vector.broadcast %cst : f32 to vector<1x32x128xf32>
    %c7 = arith.constant 7 : index
    %c0 = arith.constant 0 : index
    %c0_0 = arith.constant 0 : index
    %1 = vector.load %arg7[%c7, %c0, %c0_0] : memref<32x32x128xf32, #tpu.memory_space<vmem>>, vector<1x32x128xf32>
    tpu.vector_store %arg7[%c7, %c0, %c0_0], %0 {strides = array<i32>} : memref<32x32x128xf32, #tpu.memory_space<vmem>>, vector<1x32x128xf32>,
    %c24 = arith.constant 24 : index
    %c0_1 = arith.constant 0 : index
    %c0_2 = arith.constant 0 : index
    %2 = vector.load %arg7[%c24, %c0_1, %c0_2] : memref<32x32x128xf32, #tpu.memory_space<vmem>>, vector<1x32x128xf32>
    tpu.vector_store %arg7[%c24, %c0_1, %c0_2], %0 {strides = array<i32>} : memref<32x32x128xf32, #tpu.memory_space<vmem>>, vector<1x32x128xf32>,
    %cst_3 = arith.constant 0.000000e+00 : f32
    %3 = vector.broadcast %cst_3 : f32 to vector<16x1x128xf32>
    %c8 = arith.constant 8 : index
    %c7_4 = arith.constant 7 : index
    %c0_5 = arith.constant 0 : index
    %4 = vector.load %arg7[%c8, %c7_4, %c0_5] : memref<32x32x128xf32, #tpu.memory_space<vmem>>, vector<16x1x128xf32>
    tpu.vector_store %arg7[%c8, %c7_4, %c0_5], %3 {strides = array<i32>} : memref<32x32x128xf32, #tpu.memory_space<vmem>>, vector<16x1x128xf32>,
    %c8_6 = arith.constant 8 : index
    %c24_7 = arith.constant 24 : index
    %c0_8 = arith.constant 0 : index
    %5 = vector.load %arg7[%c8_6, %c24_7, %c0_8] : memref<32x32x128xf32, #tpu.memory_space<vmem>>, vector<16x1x128xf32>
    tpu.vector_store %arg7[%c8_6, %c24_7, %c0_8], %3 {strides = array<i32>} : memref<32x32x128xf32, #tpu.memory_space<vmem>>, vector<16x1x128xf32>,
    %c0_9 = arith.constant 0 : index
    %c0_10 = arith.constant 0 : index
    %c0_11 = arith.constant 0 : index
    %c0_12 = arith.constant 0 : index
    %6 = vector.load %arg1[%c0_9, %c0_10, %c0_11, %c0_12] : memref<1x16x16x128xf32, #tpu.memory_space<vmem>>, vector<1x16x16x128xf32>
    %7 = vector.shape_cast %6 : vector<1x16x16x128xf32> to vector<16x16x128xf32>
    %c8_13 = arith.constant 8 : index
    %c8_14 = arith.constant 8 : index
    %c0_15 = arith.constant 0 : index
    %8 = vector.load %arg7[%c8_13, %c8_14, %c0_15] : memref<32x32x128xf32, #tpu.memory_space<vmem>>, vector<16x16x128xf32>
    tpu.vector_store %arg7[%c8_13, %c8_14, %c0_15], %7 {strides = array<i32>} : memref<32x32x128xf32, #tpu.memory_space<vmem>>, vector<16x16x128xf32>,
    %c0_16 = arith.constant 0 : index
    %c0_17 = arith.constant 0 : index
    %9 = vector.load %arg2[%c0_16, %c0_17] : memref<9x128xf32, #tpu.memory_space<vmem>>, vector<9x128xf32>
    %c0_18 = arith.constant 0 : index
    %c0_19 = arith.constant 0 : index
    %10 = vector.load %arg3[%c0_18, %c0_19] : memref<1x128xf32, #tpu.memory_space<vmem>>, vector<1x128xf32>
    %11 = vector.shape_cast %10 : vector<1x128xf32> to vector<1x1x128xf32>
    %c0_20 = arith.constant 0 : index
    %c0_21 = arith.constant 0 : index
    %12 = vector.load %arg4[%c0_20, %c0_21] : memref<1x128xf32, #tpu.memory_space<vmem>>, vector<1x128xf32>
    %13 = vector.shape_cast %12 : vector<1x128xf32> to vector<1x1x128xf32>
    %c0_22 = arith.constant 0 : index
    %c0_23 = arith.constant 0 : index
    %14 = vector.load %arg5[%c0_22, %c0_23] : memref<128x128xbf16, #tpu.memory_space<vmem>>, vector<128x128xbf16>
    %cst_24 = arith.constant 0.000000e+00 : f32
    %15 = vector.broadcast %cst_24 : f32 to vector<8x16x128xf32>
    %c7_25 = arith.constant 7 : index
    %c7_26 = arith.constant 7 : index
    %c0_27 = arith.constant 0 : index
    %16 = vector.load %arg7[%c7_25, %c7_26, %c0_27] : memref<32x32x128xf32, #tpu.memory_space<vmem>>, vector<8x16x128xf32>
    %17 = vector.extract_strided_slice %9 {offsets = [0, 0], sizes = [1, 128], strides = [1, 1]} : vector<9x128xf32> to vector<1x128xf32>
    %18 = vector.shape_cast %17 : vector<1x128xf32> to vector<1x1x128xf32>
    %19 = vector.broadcast %18 : vector<1x1x128xf32> to vector<8x16x128xf32>
    %20 = arith.mulf %16, %19 : vector<8x16x128xf32>
    %21 = arith.addf %15, %20 : vector<8x16x128xf32>
    %c7_28 = arith.constant 7 : index
    %c8_29 = arith.constant 8 : index
    %c0_30 = arith.constant 0 : index
    %22 = vector.load %arg7[%c7_28, %c8_29, %c0_30] : memref<32x32x128xf32, #tpu.memory_space<vmem>>, vector<8x16x128xf32>
    %23 = vector.extract_strided_slice %9 {offsets = [1, 0], sizes = [1, 128], strides = [1, 1]} : vector<9x128xf32> to vector<1x128xf32>
    %24 = vector.shape_cast %23 : vector<1x128xf32> to vector<1x1x128xf32>
    %25 = vector.broadcast %24 : vector<1x1x128xf32> to vector<8x16x128xf32>
    %26 = arith.mulf %22, %25 : vector<8x16x128xf32>
    %27 = arith.addf %21, %26 : vector<8x16x128xf32>
    %c7_31 = arith.constant 7 : index
    %c9 = arith.constant 9 : index
    %c0_32 = arith.constant 0 : index
    %28 = vector.load %arg7[%c7_31, %c9, %c0_32] : memref<32x32x128xf32, #tpu.memory_space<vmem>>, vector<8x16x128xf32>
    %29 = vector.extract_strided_slice %9 {offsets = [2, 0], sizes = [1, 128], strides = [1, 1]} : vector<9x128xf32> to vector<1x128xf32>
    %30 = vector.shape_cast %29 : vector<1x128xf32> to vector<1x1x128xf32>
    %31 = vector.broadcast %30 : vector<1x1x128xf32> to vector<8x16x128xf32>
    %32 = arith.mulf %28, %31 : vector<8x16x128xf32>
    %33 = arith.addf %27, %32 : vector<8x16x128xf32>
    %c8_33 = arith.constant 8 : index
    %c7_34 = arith.constant 7 : index
    %c0_35 = arith.constant 0 : index
    %34 = vector.load %arg7[%c8_33, %c7_34, %c0_35] : memref<32x32x128xf32, #tpu.memory_space<vmem>>, vector<8x16x128xf32>
    %35 = vector.extract_strided_slice %9 {offsets = [3, 0], sizes = [1, 128], strides = [1, 1]} : vector<9x128xf32> to vector<1x128xf32>
    %36 = vector.shape_cast %35 : vector<1x128xf32> to vector<1x1x128xf32>
    %37 = vector.broadcast %36 : vector<1x1x128xf32> to vector<8x16x128xf32>
    %38 = arith.mulf %34, %37 : vector<8x16x128xf32>
    %39 = arith.addf %33, %38 : vector<8x16x128xf32>
    %c8_36 = arith.constant 8 : index
    %c8_37 = arith.constant 8 : index
    %c0_38 = arith.constant 0 : index
    %40 = vector.load %arg7[%c8_36, %c8_37, %c0_38] : memref<32x32x128xf32, #tpu.memory_space<vmem>>, vector<8x16x128xf32>
    %41 = vector.extract_strided_slice %9 {offsets = [4, 0], sizes = [1, 128], strides = [1, 1]} : vector<9x128xf32> to vector<1x128xf32>
    %42 = vector.shape_cast %41 : vector<1x128xf32> to vector<1x1x128xf32>
    %43 = vector.broadcast %42 : vector<1x1x128xf32> to vector<8x16x128xf32>
    %44 = arith.mulf %40, %43 : vector<8x16x128xf32>
    %45 = arith.addf %39, %44 : vector<8x16x128xf32>
    %c8_39 = arith.constant 8 : index
    %c9_40 = arith.constant 9 : index
    %c0_41 = arith.constant 0 : index
    %46 = vector.load %arg7[%c8_39, %c9_40, %c0_41] : memref<32x32x128xf32, #tpu.memory_space<vmem>>, vector<8x16x128xf32>
    %47 = vector.extract_strided_slice %9 {offsets = [5, 0], sizes = [1, 128], strides = [1, 1]} : vector<9x128xf32> to vector<1x128xf32>
    %48 = vector.shape_cast %47 : vector<1x128xf32> to vector<1x1x128xf32>
    %49 = vector.broadcast %48 : vector<1x1x128xf32> to vector<8x16x128xf32>
    %50 = arith.mulf %46, %49 : vector<8x16x128xf32>
    %51 = arith.addf %45, %50 : vector<8x16x128xf32>
    %c9_42 = arith.constant 9 : index
    %c7_43 = arith.constant 7 : index
    %c0_44 = arith.constant 0 : index
    %52 = vector.load %arg7[%c9_42, %c7_43, %c0_44] : memref<32x32x128xf32, #tpu.memory_space<vmem>>, vector<8x16x128xf32>
    %53 = vector.extract_strided_slice %9 {offsets = [6, 0], sizes = [1, 128], strides = [1, 1]} : vector<9x128xf32> to vector<1x128xf32>
    %54 = vector.shape_cast %53 : vector<1x128xf32> to vector<1x1x128xf32>
    %55 = vector.broadcast %54 : vector<1x1x128xf32> to vector<8x16x128xf32>
    %56 = arith.mulf %52, %55 : vector<8x16x128xf32>
    %57 = arith.addf %51, %56 : vector<8x16x128xf32>
    %c9_45 = arith.constant 9 : index
    %c8_46 = arith.constant 8 : index
    %c0_47 = arith.constant 0 : index
    %58 = vector.load %arg7[%c9_45, %c8_46, %c0_47] : memref<32x32x128xf32, #tpu.memory_space<vmem>>, vector<8x16x128xf32>
    %59 = vector.extract_strided_slice %9 {offsets = [7, 0], sizes = [1, 128], strides = [1, 1]} : vector<9x128xf32> to vector<1x128xf32>
    %60 = vector.shape_cast %59 : vector<1x128xf32> to vector<1x1x128xf32>
    %61 = vector.broadcast %60 : vector<1x1x128xf32> to vector<8x16x128xf32>
    %62 = arith.mulf %58, %61 : vector<8x16x128xf32>
    %63 = arith.addf %57, %62 : vector<8x16x128xf32>
    %c9_48 = arith.constant 9 : index
    %c9_49 = arith.constant 9 : index
    %c0_50 = arith.constant 0 : index
    %64 = vector.load %arg7[%c9_48, %c9_49, %c0_50] : memref<32x32x128xf32, #tpu.memory_space<vmem>>, vector<8x16x128xf32>
    %65 = vector.extract_strided_slice %9 {offsets = [8, 0], sizes = [1, 128], strides = [1, 1]} : vector<9x128xf32> to vector<1x128xf32>
    %66 = vector.shape_cast %65 : vector<1x128xf32> to vector<1x1x128xf32>
    %67 = vector.broadcast %66 : vector<1x1x128xf32> to vector<8x16x128xf32>
    %68 = arith.mulf %64, %67 : vector<8x16x128xf32>
    %69 = arith.addf %63, %68 : vector<8x16x128xf32>
    %70 = vector.broadcast %11 : vector<1x1x128xf32> to vector<8x16x128xf32>
    %71 = arith.mulf %69, %70 : vector<8x16x128xf32>
    %72 = vector.broadcast %13 : vector<1x1x128xf32> to vector<8x16x128xf32>
    %73 = arith.addf %71, %72 : vector<8x16x128xf32>
    %74 = vector.shape_cast %73 : vector<8x16x128xf32> to vector<128x128xf32>
    %75 = arith.truncf %74 : vector<128x128xf32> to vector<128x128xbf16>
    %cst_51 = arith.constant dense<0.000000e+00> : vector<128x128xf32>
    %76 = tpu.matmul %75, %14, %cst_51 {dimension_numbers = #tpu.dot_dimension_numbers<[1], [0], [0], [1], [0, 0, 1, 1], [], []>} : vector<128x128xbf16>, vector<128x128xbf16>, vector<128x128xf32> -> vector<128x128xf32>
    %cst_52 = arith.constant 0.333333343 : f32
    %77 = vector.broadcast %cst_52 : f32 to vector<128x128xf32>
    %78 = arith.mulf %76, %77 : vector<128x128xf32>
    %c0_53 = arith.constant 0 : index
    %c0_54 = arith.constant 0 : index
    %c0_55 = arith.constant 0 : index
    %79 = vector.load %arg6[%c0_53, %c0_54, %c0_55] : memref<1x256x128xf32, #tpu.memory_space<vmem>>, vector<1x128x128xf32>
    %80 = vector.shape_cast %79 : vector<1x128x128xf32> to vector<128x128xf32>
    %81 = vector.shape_cast %78 : vector<128x128xf32> to vector<1x128x128xf32>
    tpu.vector_store %arg6[%c0_53, %c0_54, %c0_55], %81 {strides = array<i32>} : memref<1x256x128xf32, #tpu.memory_space<vmem>>, vector<1x128x128xf32>,
    %cst_56 = arith.constant 0.000000e+00 : f32
    %82 = vector.broadcast %cst_56 : f32 to vector<8x16x128xf32>
    %c15 = arith.constant 15 : index
    %c7_57 = arith.constant 7 : index
    %c0_58 = arith.constant 0 : index
    %83 = vector.load %arg7[%c15, %c7_57, %c0_58] : memref<32x32x128xf32, #tpu.memory_space<vmem>>, vector<8x16x128xf32>
    %84 = vector.extract_strided_slice %9 {offsets = [0, 0], sizes = [1, 128], strides = [1, 1]} : vector<9x128xf32> to vector<1x128xf32>
    %85 = vector.shape_cast %84 : vector<1x128xf32> to vector<1x1x128xf32>
    %86 = vector.broadcast %85 : vector<1x1x128xf32> to vector<8x16x128xf32>
    %87 = arith.mulf %83, %86 : vector<8x16x128xf32>
    %88 = arith.addf %82, %87 : vector<8x16x128xf32>
    %c15_59 = arith.constant 15 : index
    %c8_60 = arith.constant 8 : index
    %c0_61 = arith.constant 0 : index
    %89 = vector.load %arg7[%c15_59, %c8_60, %c0_61] : memref<32x32x128xf32, #tpu.memory_space<vmem>>, vector<8x16x128xf32>
    %90 = vector.extract_strided_slice %9 {offsets = [1, 0], sizes = [1, 128], strides = [1, 1]} : vector<9x128xf32> to vector<1x128xf32>
    %91 = vector.shape_cast %90 : vector<1x128xf32> to vector<1x1x128xf32>
    %92 = vector.broadcast %91 : vector<1x1x128xf32> to vector<8x16x128xf32>
    %93 = arith.mulf %89, %92 : vector<8x16x128xf32>
    %94 = arith.addf %88, %93 : vector<8x16x128xf32>
    %c15_62 = arith.constant 15 : index
    %c9_63 = arith.constant 9 : index
    %c0_64 = arith.constant 0 : index
    %95 = vector.load %arg7[%c15_62, %c9_63, %c0_64] : memref<32x32x128xf32, #tpu.memory_space<vmem>>, vector<8x16x128xf32>
    %96 = vector.extract_strided_slice %9 {offsets = [2, 0], sizes = [1, 128], strides = [1, 1]} : vector<9x128xf32> to vector<1x128xf32>
    %97 = vector.shape_cast %96 : vector<1x128xf32> to vector<1x1x128xf32>
    %98 = vector.broadcast %97 : vector<1x1x128xf32> to vector<8x16x128xf32>
    %99 = arith.mulf %95, %98 : vector<8x16x128xf32>
    %100 = arith.addf %94, %99 : vector<8x16x128xf32>
    %c16 = arith.constant 16 : index
    %c7_65 = arith.constant 7 : index
    %c0_66 = arith.constant 0 : index
    %101 = vector.load %arg7[%c16, %c7_65, %c0_66] : memref<32x32x128xf32, #tpu.memory_space<vmem>>, vector<8x16x128xf32>
    %102 = vector.extract_strided_slice %9 {offsets = [3, 0], sizes = [1, 128], strides = [1, 1]} : vector<9x128xf32> to vector<1x128xf32>
    %103 = vector.shape_cast %102 : vector<1x128xf32> to vector<1x1x128xf32>
    %104 = vector.broadcast %103 : vector<1x1x128xf32> to vector<8x16x128xf32>
    %105 = arith.mulf %101, %104 : vector<8x16x128xf32>
    %106 = arith.addf %100, %105 : vector<8x16x128xf32>
    %c16_67 = arith.constant 16 : index
    %c8_68 = arith.constant 8 : index
    %c0_69 = arith.constant 0 : index
    %107 = vector.load %arg7[%c16_67, %c8_68, %c0_69] : memref<32x32x128xf32, #tpu.memory_space<vmem>>, vector<8x16x128xf32>
    %108 = vector.extract_strided_slice %9 {offsets = [4, 0], sizes = [1, 128], strides = [1, 1]} : vector<9x128xf32> to vector<1x128xf32>
    %109 = vector.shape_cast %108 : vector<1x128xf32> to vector<1x1x128xf32>
    %110 = vector.broadcast %109 : vector<1x1x128xf32> to vector<8x16x128xf32>
    %111 = arith.mulf %107, %110 : vector<8x16x128xf32>
    %112 = arith.addf %106, %111 : vector<8x16x128xf32>
    %c16_70 = arith.constant 16 : index
    %c9_71 = arith.constant 9 : index
    %c0_72 = arith.constant 0 : index
    %113 = vector.load %arg7[%c16_70, %c9_71, %c0_72] : memref<32x32x128xf32, #tpu.memory_space<vmem>>, vector<8x16x128xf32>
    %114 = vector.extract_strided_slice %9 {offsets = [5, 0], sizes = [1, 128], strides = [1, 1]} : vector<9x128xf32> to vector<1x128xf32>
    %115 = vector.shape_cast %114 : vector<1x128xf32> to vector<1x1x128xf32>
    %116 = vector.broadcast %115 : vector<1x1x128xf32> to vector<8x16x128xf32>
    %117 = arith.mulf %113, %116 : vector<8x16x128xf32>
    %118 = arith.addf %112, %117 : vector<8x16x128xf32>
    %c17 = arith.constant 17 : index
    %c7_73 = arith.constant 7 : index
    %c0_74 = arith.constant 0 : index
    %119 = vector.load %arg7[%c17, %c7_73, %c0_74] : memref<32x32x128xf32, #tpu.memory_space<vmem>>, vector<8x16x128xf32>
    %120 = vector.extract_strided_slice %9 {offsets = [6, 0], sizes = [1, 128], strides = [1, 1]} : vector<9x128xf32> to vector<1x128xf32>
    %121 = vector.shape_cast %120 : vector<1x128xf32> to vector<1x1x128xf32>
    %122 = vector.broadcast %121 : vector<1x1x128xf32> to vector<8x16x128xf32>
    %123 = arith.mulf %119, %122 : vector<8x16x128xf32>
    %124 = arith.addf %118, %123 : vector<8x16x128xf32>
    %c17_75 = arith.constant 17 : index
    %c8_76 = arith.constant 8 : index
    %c0_77 = arith.constant 0 : index
    %125 = vector.load %arg7[%c17_75, %c8_76, %c0_77] : memref<32x32x128xf32, #tpu.memory_space<vmem>>, vector<8x16x128xf32>
    %126 = vector.extract_strided_slice %9 {offsets = [7, 0], sizes = [1, 128], strides = [1, 1]} : vector<9x128xf32> to vector<1x128xf32>
    %127 = vector.shape_cast %126 : vector<1x128xf32> to vector<1x1x128xf32>
    %128 = vector.broadcast %127 : vector<1x1x128xf32> to vector<8x16x128xf32>
    %129 = arith.mulf %125, %128 : vector<8x16x128xf32>
    %130 = arith.addf %124, %129 : vector<8x16x128xf32>
    %c17_78 = arith.constant 17 : index
    %c9_79 = arith.constant 9 : index
    %c0_80 = arith.constant 0 : index
    %131 = vector.load %arg7[%c17_78, %c9_79, %c0_80] : memref<32x32x128xf32, #tpu.memory_space<vmem>>, vector<8x16x128xf32>
    %132 = vector.extract_strided_slice %9 {offsets = [8, 0], sizes = [1, 128], strides = [1, 1]} : vector<9x128xf32> to vector<1x128xf32>
    %133 = vector.shape_cast %132 : vector<1x128xf32> to vector<1x1x128xf32>
    %134 = vector.broadcast %133 : vector<1x1x128xf32> to vector<8x16x128xf32>
    %135 = arith.mulf %131, %134 : vector<8x16x128xf32>
    %136 = arith.addf %130, %135 : vector<8x16x128xf32>
    %137 = vector.broadcast %11 : vector<1x1x128xf32> to vector<8x16x128xf32>
    %138 = arith.mulf %136, %137 : vector<8x16x128xf32>
    %139 = vector.broadcast %13 : vector<1x1x128xf32> to vector<8x16x128xf32>
    %140 = arith.addf %138, %139 : vector<8x16x128xf32>
    %141 = vector.shape_cast %140 : vector<8x16x128xf32> to vector<128x128xf32>
    %142 = arith.truncf %141 : vector<128x128xf32> to vector<128x128xbf16>
    %cst_81 = arith.constant dense<0.000000e+00> : vector<128x128xf32>
    %143 = tpu.matmul %142, %14, %cst_81 {dimension_numbers = #tpu.dot_dimension_numbers<[1], [0], [0], [1], [0, 0, 1, 1], [], []>} : vector<128x128xbf16>, vector<128x128xbf16>, vector<128x128xf32> -> vector<128x128xf32>
    %cst_82 = arith.constant 0.333333343 : f32
    %144 = vector.broadcast %cst_82 : f32 to vector<128x128xf32>
    %145 = arith.mulf %143, %144 : vector<128x128xf32>
    %c0_83 = arith.constant 0 : index
    %c128 = arith.constant 128 : index
    %c0_84 = arith.constant 0 : index
    %146 = vector.load %arg6[%c0_83, %c128, %c0_84] : memref<1x256x128xf32, #tpu.memory_space<vmem>>, vector<1x128x128xf32>
    %147 = vector.shape_cast %146 : vector<1x128x128xf32> to vector<128x128xf32>
    %148 = vector.shape_cast %145 : vector<128x128xf32> to vector<1x128x128xf32>
    tpu.vector_store %arg6[%c0_83, %c128, %c0_84], %148 {strides = array<i32>} : memref<1x256x128xf32, #tpu.memory_space<vmem>>, vector<1x128x128xf32>,
    return
  }
  func.func @transform_0(%arg0: i32) -> (i32, i32, i32, i32) {
    %c0_i32 = arith.constant 0 : i32
    %c0_i32_0 = arith.constant 0 : i32
    %c0_i32_1 = arith.constant 0 : i32
    %c0_i32_2 = arith.constant 0 : i32
    return %arg0, %c0_i32, %c0_i32_0, %c0_i32_1 : i32, i32, i32, i32
  }
  func.func @transform_1(%arg0: i32) -> (i32, i32) {
    %c0_i32 = arith.constant 0 : i32
    %c0_i32_0 = arith.constant 0 : i32
    %c0_i32_1 = arith.constant 0 : i32
    return %c0_i32, %c0_i32_0 : i32, i32
  }
  func.func @transform_2(%arg0: i32) -> (i32, i32) {
    %c0_i32 = arith.constant 0 : i32
    %c0_i32_0 = arith.constant 0 : i32
    %c0_i32_1 = arith.constant 0 : i32
    return %c0_i32, %c0_i32_0 : i32, i32
  }
  func.func @transform_3(%arg0: i32) -> (i32, i32) {
    %c0_i32 = arith.constant 0 : i32
    %c0_i32_0 = arith.constant 0 : i32
    %c0_i32_1 = arith.constant 0 : i32
    return %c0_i32, %c0_i32_0 : i32, i32
  }
  func.func @transform_4(%arg0: i32) -> (i32, i32) {
    %c0_i32 = arith.constant 0 : i32
    %c0_i32_0 = arith.constant 0 : i32
    %c0_i32_1 = arith.constant 0 : i32
    return %c0_i32, %c0_i32_0 : i32, i32
  }
  func.func @transform_5(%arg0: i32) -> (i32, i32, i32) {
    %c0_i32 = arith.constant 0 : i32
    %c0_i32_0 = arith.constant 0 : i32
    %c0_i32_1 = arith.constant 0 : i32
    return %arg0, %c0_i32, %c0_i32_0 : i32, i32, i32
  }
}

</mosaic_0001>

<bundles_post_ra>
// kernel: aspp_unit_forward.1
= control target key start
LH: loop header
LB: loop body
LE: loop exit
PB: predicated region body
PF: predicated region fallthrough
CT: control target
= control target key end

     0   :  { %10 = vsyncpa [#allocation4], 0  ;;  %s3306_s0 = inlined_call_operand.hbm [shape: f32[2,16,16,128], index: 0, kind: input, shape index: {}]   ;;  %s3307_s1 = inlined_call_operand.hbm [shape: f32[9,128], index: 1, kind: input, shape index: {}]   ;;  %s3308_s2 = inlined_call_operand.vmem [shape: f32[1,128], index: 2, kind: input, shape index: {}]   ;;  %s3309_s3 = inlined_call_operand.hbm [shape: f32[1,128], index: 3, kind: input, shape index: {}]   ;;  %s3310_s4 = inlined_call_operand.hbm [shape: bf16[128,128], index: 4, kind: input, shape index: {}]   ;;  %s3311_s5 = inlined_call_operand.hbm [shape: f32[2,256,128], index: 5, kind: output, shape index: {}]  }
   0x1   :  { %12 = vsyncpa [#allocation4 + $0x1], 0 }
   0x2   :  { %13 = vsyncpa [#allocation7], 0 }
   0x3   :  { %14 = vsyncpa [#allocation10], 0 }
   0x4   :  { %15 = vsyncpa [#allocation5], 0 }
   0x5   :  { %17 = vsyncpa [#allocation5 + $0x1], 0  ;;  %s2118_s18 = smov 0   ;;  %s2120_s19 = smov 0  }
   0x6   :  { %s2122_s20 = smov 0   ;;  %s2124_s21 = smov 0  }
   0x7 LB: > { %s2139_s22 = sadd.s32 4294967295, %s2076_s21   ;;  %s1711_s23 = sadd.s32 4294967294, %s2076_s21   ;;  %s2076_s21 = sphi %s2124_s21, %s3551_s21   ;;  %s2072_s20 = sphi %s2122_s20, %s3550_s20   ;;  %s2068_s19 = sphi %s2120_s19, %s3549_s19   ;;  %s2064_s18 = sphi %s2118_s18, %s3548_s18  }
   0x8   : > { %p43_p0 = scmp.ne.s32.totalorder %s2068_s19, %s2064_s18  ;;  %p44_p1 = scmp.eq.s32.totalorder %s2139_s22, 0 }
   0x9   : > { %p151_p2 = scmp.eq.s32.totalorder %s2139_s22, 1  ;;  %p157_p3 = scmp.eq.s32.totalorder %s1711_s23, 1 }
   0xa   : > { %p2148_p4 = por %p44_p1, %p43_p0  ;;  %p1712_p5 = scmp.ge.s32.totalorder %s2076_s21, 1 }
   0xb   : > { %p2153_p6 = por %p157_p3, %p43_p0  ;;  %p164_p7 = scmp.lt.s32.totalorder %s2076_s21, 3 }
   0xc   : > { %s175_s28 = sshll.u32 %s3307_s1, 4  ;;  %s2078_s30 = smov [#allocation6]   ;;  %s176_s28 = int_to_ptr.hbm [resolvable:$true] %s175_s28 }
   0xd   : > { %p2161_p8 = pnand %p1712_p5, %p164_p7  ;;  %s177_s6 = sshll.u32 %s2078_s30, 4  ;;  %s178_s6 = int_to_ptr.vmem [resolvable:$true] %s177_s6 }
   0xe   : > { %s193_s10 = sshll.u32 %s3309_s3, 4  ;;  %s3312_s11 = smov 128   ;;  %s194_s10 = int_to_ptr.hbm [resolvable:$true] %s193_s10 }
   0xf   : > { %p1805_p9 = pneg %p2161_p8  ;;  %s2080_s12 = smov 8  }
  0x10   : > { %s2081_s13 = smov [#allocation8]   ;;  %s204_s17 = sshll.u32 %s3310_s4, 4  ;;  %s205_s17 = int_to_ptr.hbm [resolvable:$true] %s204_s17 }
  0x11   : > { %p2169_p10 = pnand %p1805_p9, %p44_p1  ;;  %s195_s14 = sshll.u32 %s2081_s13, 4  ;;  %s196_s14 = int_to_ptr.vmem [resolvable:$true] %s195_s14 }
  0x12   : > { %s2082_s23 = smov [#allocation9]   ;;  %s2083_s27 = smov 64  }
  0x13   : > { %1808 = dma.hbm_to_vmem [thread:$0]  (!%p2169_p10), %s176_s28, 256, %s178_s6, [#allocation7], %s3312_s11, %s3312_s11, %s2080_s12  }
  0x14   : > { %1811 = dma.hbm_to_vmem [thread:$0]  (!%p2169_p10), %s194_s10, 16, %s196_s14, [#allocation7]  }
  0x15   : > { %s206_s26 = sshll.u32 %s2082_s23, 4  ;;  %s2084_s28 = smov 4   ;;  %s207_s26 = int_to_ptr.vmem [resolvable:$true] %s206_s26 }
  0x16   : > { %1814 = dma.hbm_to_vmem [thread:$0]  (!%p2169_p10), %s205_s17, 1024, %s207_s26, [#allocation10], %s2083_s27, %s2083_s27, %s2084_s28  }
  0x17   : > { %s2190_s30 = sadd.s32 1, %s2076_s21   ;;  %s30_s8 = sadd.s32 1, %s2072_s20 }
  0x18   : > { %s27_s6 = ssub.s32 %s2076_s21, %s2190_s30  ;;  %p37_p13 = scmp.ne.s32.totalorder %s2072_s20, %s2068_s19 }
  0x19   : > { %p28_p12 = scmp.eq.s32.totalorder %s27_s6, 0  ;;  %p38_p0 = scmp.eq.s32.totalorder %s2076_s21, 0 }
  0x1a   : > { %p2203_p3 = por %p151_p2, %p37_p13  ;;  %p1826_p5 = scmp.lt.s32.totalorder %s2076_s21, 2 }
  0x1b   : > { %s2199_s9 = scalar_select %p28_p12, %s2072_s20, %s30_s8  }
  0x1c   : > { %s220_s13 = sand.u32 1, %s2072_s20   ;;  %s1763_s14 = sshll.u32 %s2076_s21, 8 }
  0x1d   : > { %p39_p7 = por %p38_p0, %p37_p13  ;;  %s1717_s7 = sshll.u32 %s220_s13, 8 }
  0x1e   : > { %s229_s17 = scalar_lea.hbm %s3306_s0, %s1763_s14  ;;  %s224_s26 = scalar_lea.vmem [#allocation3], %s1717_s7 }
  0x1f   : > { %s230_s23 = sshll.u32 %s229_s17, 4  ;;  %s232_s27 = sshll.u32 %s224_s26, 4  ;;  %s231_s23 = int_to_ptr.hbm [resolvable:$true] %s230_s23  ;;  %s233_s27 = int_to_ptr.vmem [resolvable:$true] %s232_s27 }
  0x20   : > { %p2213_p9 = pnand %p1826_p5, %p39_p7  ;;  %s221_s6 = scalar_lea.sflag [#allocation4], %s220_s13 }
  0x21   : > { %s1972_s8 = sshra.s32 %s231_s23, 4  ;;  %s1979_s7 = scalar_lea.hbm %s3306_s0, 512  ;;  %s1973_s8 = int_to_ptr.hbm [resolvable:$true] %s1972_s8 }
  0x22   : > { %s1974_s11 = scalar_lea.hbm %s1973_s8, 256  ;;  %p1976_p10 = pneg %p2213_p9 }
  0x23   : > { %p1975_p2 = scmp.ne.s32.totalorder %s1973_s8, %s1974_s11  ;;  %p1980_p0 = scmp.lt.s32.totalorder %s1973_s8, %s3306_s0 }
  0x24   : > { %p1981_p5 = scmp.lt.s32.totalorder %s1979_s7, %s1974_s11 }
  0x25   : > { %p1977_p12 = pnand %p1976_p10, %p1975_p2 }
  0x26   : > { %p1982_p7 = por %p1981_p5, %p1980_p0 }
  0x27   : > { %p1978_p13 = pneg %p1977_p12 }
  0x29   : > { %p1983_p11 = pnand %p1982_p7, %p1978_p13 }
  0x2b   : > { %1986 = shalt.err (!%p1983_p11)
}
  0x2c   : > { %s3413_s13 = smov 128   ;;  %244 = sbr.rel (%p2161_p8) target bundleno = 449 (0x1c1), region = 40 }
  0x2d   : > { %1818 = dma.hbm_to_vmem [thread:$0]  (!%p2213_p9), %s231_s23, 4096, %s233_s27, %s221_s6, %s3413_s13, %s3413_s13, %s2080_s12  }
  0x31   : > { %s2233_s26 = sand.u32 1, %s2068_s19  }
  0x32   : > { %s1721_s11 = sshll.u32 %s2233_s26, 8  ;;  %s247_s8 = scalar_lea.sflag [#allocation4], %s2233_s26 }
  0x33   : > { %s2239_s14 = scalar_lea.vmem [#allocation3], %s1721_s11 }
  0x34   : > { %2047 = dma.done.wait (%p2148_p4), %s247_s8, 4096  }
  0x35   : > { %2049 = vsyncadd (%p2148_p4), %s247_s8, 4294963200 }
  0x36   : > { %2051 = dma.done.wait (%p44_p1), [#allocation7], 272  }
  0x37   : > { %2053 = vsyncadd (%p44_p1), [#allocation7], 4294967024 }
  0x38   : > { %2055 = dma.done.wait (%p44_p1), [#allocation10], 1024  }
  0x39   : > { %2057 = vsyncadd (%p44_p1), [#allocation10], 4294966272  ;;  %v2085_v0 = vmov 0.0   ;;  %v1771_v1 = vld [vmem:[#allocation9 + $0x38] sm:$0xff]  ;;  %v1770_v2 = vld [vmem:[#allocation9 + $0x30] sm:$0xff]  ;;  %s3232_s27 = scalar_lea.vmem [#allocation11], %s1721_s11 }
  0x3a   : > { %294 = vst [vmem:[#allocation2 + $0xe0] sm:$0xff] %v2085_v0  ;;  %956 = vmatpush.bf16.msra.mxu0 %v1771_v1  ;;  %1773 = vmatpush.bf16.msra.mxu2 %v1771_v1  ;;  %v2262_v3 = vld [vmem:[%s2239_s14] sm:$0xff]  ;;  %v2266_v4 = vld [vmem:[%s2239_s14 + $0x8] sm:$0xff]  ;;  %v2269_v5 = vld [vmem:[%s2239_s14 + $0x10] sm:$0xff]  ;;  %s1772_s28 = sshll.u32 %s2139_s22, 8  ;;  %s1606_s16 = sshll.u32 %s3232_s27, 4  ;;  %s1607_s16 = int_to_ptr.vmem [resolvable:$true] %s1606_s16 }
  0x3b   : > { %295 = vst [vmem:[#allocation2 + $0xe8] sm:$0xff] %v2085_v0  ;;  %1512 = vmatpush.bf16.msra.mxu1 %v1771_v1  ;;  %1781 = vmatpush.bf16.msra.mxu3 %v1771_v1  ;;  %v2272_v6 = vld [vmem:[%s2239_s14 + $0x18] sm:$0xff]  ;;  %v400_v7 = vld [vmem:[#allocation6] sm:$0xff]  ;;  %v1767_v42 = vld [vmem:[#allocation9 + $0x18] sm:$0xff]  ;;  %s1605_s7 = scalar_lea.hbm %s3311_s5, %s1772_s28  ;;  %s1594_s13 = scalar_lea.sflag [#allocation5], %s2233_s26 }
  0x3c   : > { %296 = vst [vmem:[#allocation2 + $0xf0] sm:$0xff] %v2085_v0  ;;  %v2277_v10 = vperm.slane %v400_v7, 0  ;;  %v1769_v11 = vld [vmem:[#allocation9 + $0x28] sm:$0xff]  ;;  %v2280_v12 = vperm.slane %v400_v7, 1  ;;  %v2282_v15 = vperm.slane %v400_v7, 2  ;;  %v2286_v18 = vperm.slane %v400_v7, 3 }
  0x3d   : > { %297 = vst [vmem:[#allocation2 + $0xf8] sm:$0xff] %v2085_v0  ;;  %v2288_v19 = vperm.slane %v400_v7, 4  ;;  %v2294_v23 = vperm.slane %v400_v7, 5  ;;  %v1768_v24 = vld [vmem:[#allocation9 + $0x20] sm:$0xff]  ;;  %v2310_v33 = vperm.slane %v400_v7, 6  ;;  %v2324_v41 = vperm.slane %v400_v7, 7 }
  0x3e   : > { %304 = vst [vmem:[#allocation2 + $0x107] sm:$0x1] %v2085_v0  ;;  %957 = vmatpush.bf16.msra.mxu0 %v1770_v2  ;;  %1774 = vmatpush.bf16.msra.mxu2 %v1770_v2  ;;  %v486_v20 = vmul.f32 0.0, %v2280_v12  ;;  %v2335_v50 = vld [vmem:[#allocation6 + $0x8] ss:$0 sm:$0xff]  ;;  %v1765_v62 = vld [vmem:[#allocation9 + $0x8] sm:$0xff] }
  0x3f   : > { %305 = vst [vmem:[#allocation2 + $0x127] sm:$0x1] %v2085_v0  ;;  %1513 = vmatpush.bf16.msra.mxu1 %v1770_v2  ;;  %1782 = vmatpush.bf16.msra.mxu3 %v1770_v2  ;;  %v633_v30 = vmul.f32 %v2288_v19, %v2262_v3  ;;  %v634_v37 = vmul.f32 %v2288_v19, %v2266_v4  ;;  %v1766_v54 = vld [vmem:[#allocation9 + $0x10] sm:$0xff]  ;;  %v2358_v2 = vld [vmem:[%s3308_s2] ss:$0 sm:$0xff]  ;;  %s1608_s17 = sshll.u32 %s1605_s7, 4  ;;  %s1609_s17 = int_to_ptr.hbm [resolvable:$true] %s1608_s17 }
  0x40   : > { %320 = vst [vmem:[#allocation2 + $0x118] sm:$0x1] %v2085_v0  ;;  %v781_v51 = vmul.f32 %v2324_v41, %v2269_v5  ;;  %v782_v57 = vmul.f32 %v2324_v41, %v2272_v6  ;;  %s2016_s11 = sshra.s32 %s1609_s17, 4  ;;  %s2022_s24 = scalar_lea.hbm %s3311_s5, 512  ;;  %s2017_s11 = int_to_ptr.hbm [resolvable:$true] %s2016_s11 }
  0x41   : > { %321 = vst [vmem:[#allocation2 + $0x138] sm:$0x1] %v2085_v0  ;;  %s2018_s8 = scalar_lea.hbm %s2017_s11, 256  ;;  %p2023_p11 = scmp.lt.s32.totalorder %s2017_s11, %s3311_s5 }
  0x42   : > { %299 = vst [vmem:[#allocation2 + $0x300] sm:$0xff] %v2085_v0  ;;  %v420_v8 = vld [vmem:[#allocation2 + $0xe7] sm:$0xff]  ;;  %958 = vmatpush.bf16.msra.mxu0 %v1769_v11  ;;  %1775 = vmatpush.bf16.msra.mxu2 %v1769_v11  ;;  %p2019_p1 = scmp.ne.s32.totalorder %s2017_s11, %s2018_s8  ;;  %p2024_p9 = scmp.lt.s32.totalorder %s2022_s24, %s2018_s8 }
  0x43   : > { %368 = vst [vmem:[#allocation2 + $0x108] sm:$0xff] %v2262_v3  ;;  %v421_v9 = vld [vmem:[#allocation2 + $0xef] sm:$0xff]  ;;  %v437_v16 = vmul.f32 %v2277_v10, %v420_v8  ;;  %1514 = vmatpush.bf16.msra.mxu1 %v1769_v11  ;;  %1783 = vmatpush.bf16.msra.mxu3 %v1769_v11 }
  0x44   : > { %369 = vst [vmem:[#allocation2 + $0x110] sm:$0xff] %v2266_v4  ;;  %v518_v13 = vld [vmem:[#allocation2 + $0xe9] sm:$0xff]  ;;  %v519_v14 = vld [vmem:[#allocation2 + $0xf1] sm:$0xff]  ;;  %v438_v17 = vmul.f32 %v2277_v10, %v421_v9  ;;  %p2020_p4 = pnand %p2019_p1, %p2203_p3  ;;  %p2025_p2 = por %p2024_p9, %p2023_p11 }
  0x45   : > { %370 = vst [vmem:[#allocation2 + $0x128] sm:$0xff] %v2269_v5  ;;  %v535_v21 = vmul.f32 %v2282_v15, %v518_v13  ;;  %v536_v22 = vmul.f32 %v2282_v15, %v519_v14  ;;  %v502_v25 = vadd.f32 %v486_v20, %v437_v16  ;;  %v2362_v9 = vld [vmem:[#allocation8] ss:$0 sm:$0xff]  ;;  %v1764_v11 = vld [vmem:[#allocation9] sm:$0xff] }
  0x46   : > { %371 = vst [vmem:[#allocation2 + $0x130] sm:$0xff] %v2272_v6  ;;  %v503_v26 = vadd.f32 %v486_v20, %v438_v17  ;;  %959 = vmatpush.bf16.msra.mxu0 %v1768_v24  ;;  %1776 = vmatpush.bf16.msra.mxu2 %v1768_v24  ;;  %p2021_p8 = pneg %p2020_p4 }
  0x47   : > { %3414 = vst [vmem:[#allocation16_spill] sm:$0xff] %v2280_v12  ;;  %v551_v34 = vadd.f32 %v535_v21, %v502_v25  ;;  %1515 = vmatpush.bf16.msra.mxu1 %v1768_v24  ;;  %1784 = vmatpush.bf16.msra.mxu3 %v1768_v24  ;;  %v2382_v21 = vld [vmem:[%s2239_s14 + $0x30] sm:$0xff]  ;;  %v344_v24 = vld [vmem:[%s2239_s14 + $0x40] sm:$0xff]  ;;  %v345_v25 = vld [vmem:[%s2239_s14 + $0x48] sm:$0xff] }
  0x48   : > { %3415 = vst [vmem:[#allocation17_spill] sm:$0xff] %v2288_v19  ;;  %v552_v35 = vadd.f32 %v536_v22, %v503_v26  ;;  %v2386_v22 = vld [vmem:[%s2239_s14 + $0x38] sm:$0xff]  ;;  %v2393_v26 = vld [vmem:[%s2239_s14 + $0x50] sm:$0xff]  ;;  %p2026_p10 = pnand %p2025_p2, %p2021_p8 }
  0x49   : > { %300 = vst [vmem:[#allocation2 + $0x308] sm:$0xff] %v2085_v0 }
  0x4a   : > { %301 = vst [vmem:[#allocation2 + $0x310] sm:$0xff] %v2085_v0  ;;  %v2297_v27 = vld [vmem:[#allocation2 + $0x107] sm:$0xff]  ;;  %960 = vmatpush.bf16.msra.mxu0 %v1767_v42  ;;  %1777 = vmatpush.bf16.msra.mxu2 %v1767_v42 }
  0x4b   : > { %302 = vst [vmem:[#allocation2 + $0x318] sm:$0xff] %v2085_v0  ;;  %v2300_v28 = vld [vmem:[#allocation2 + $0x10f] sm:$0xff]  ;;  %v584_v29 = vmul.f32 %v2286_v18, %v2297_v27  ;;  %1516 = vmatpush.bf16.msra.mxu1 %v1767_v42  ;;  %1785 = vmatpush.bf16.msra.mxu3 %v1767_v42 }
  0x4c   : > { %v2306_v31 = vld [vmem:[#allocation2 + $0x109] sm:$0xff]  ;;  %v2308_v32 = vld [vmem:[#allocation2 + $0x111] sm:$0xff]  ;;  %306 = vst [vmem:[#allocation2 + $0x147] sm:$0x1] %v2085_v0  ;;  %v585_v36 = vmul.f32 %v2286_v18, %v2300_v28 }
  0x4d   : > { %307 = vst [vmem:[#allocation2 + $0x167] sm:$0x1] %v2085_v0  ;;  %v682_v38 = vmul.f32 %v2294_v23, %v2306_v31  ;;  %v2320_v39 = vld [vmem:[#allocation2 + $0x127] sm:$0xff]  ;;  %v2322_v40 = vld [vmem:[#allocation2 + $0x12f] sm:$0xff]  ;;  %v600_v43 = vadd.f32 %v584_v29, %v551_v34  ;;  %v683_v45 = vmul.f32 %v2294_v23, %v2308_v32  ;;  %v2396_v29 = vld [vmem:[%s2239_s14 + $0x58] sm:$0xff] }
  0x4e   : > { %308 = vst [vmem:[#allocation2 + $0x187] sm:$0x1] %v2085_v0  ;;  %v601_v44 = vadd.f32 %v585_v36, %v552_v35  ;;  %v732_v48 = vmul.f32 %v2310_v33, %v2320_v39  ;;  %v733_v49 = vmul.f32 %v2310_v33, %v2322_v40  ;;  %v2340_v52 = vld [vmem:[#allocation2 + $0x129] sm:$0xff]  ;;  %v2342_v53 = vld [vmem:[#allocation2 + $0x131] sm:$0xff]  ;;  %961 = vmatpush.bf16.msra.mxu0 %v1766_v54 }
  0x4f   : > { %309 = vst [vmem:[#allocation2 + $0x1a7] sm:$0x1] %v2085_v0  ;;  %v649_v46 = vadd.f32 %v633_v30, %v600_v43  ;;  %v830_v60 = vmul.f32 %v2335_v50, %v2340_v52  ;;  %v831_v61 = vmul.f32 %v2335_v50, %v2342_v53  ;;  %1778 = vmatpush.bf16.msra.mxu2 %v1766_v54  ;;  %v2402_v34 = vld [vmem:[%s2239_s14 + $0x70] sm:$0xff]  ;;  %v2421_v42 = vld [vmem:[%s2239_s14 + $0x88] sm:$0xff] }
  0x50   : > { %310 = vst [vmem:[#allocation2 + $0x1c7] sm:$0x1] %v2085_v0  ;;  %v650_v47 = vadd.f32 %v634_v37, %v601_v44  ;;  %1517 = vmatpush.bf16.msra.mxu1 %v1766_v54  ;;  %1786 = vmatpush.bf16.msra.mxu3 %v1766_v54  ;;  %v494_v30 = vmul.f32 %v2280_v12, %v2382_v21  ;;  %v2415_v37 = vld [vmem:[%s2239_s14 + $0x78] sm:$0xff] }
  0x51   : > { %311 = vst [vmem:[#allocation2 + $0x1e7] sm:$0x1] %v2085_v0  ;;  %v698_v55 = vadd.f32 %v682_v38, %v649_v46  ;;  %v2409_v35 = vmul.f32 %v2288_v19, %v344_v24  ;;  %v2412_v36 = vmul.f32 %v2288_v19, %v345_v25  ;;  %v2418_v38 = vld [vmem:[%s2239_s14 + $0x80] sm:$0xff]  ;;  %v2425_v43 = vmul.f32 %v2280_v12, %v2402_v34  ;;  %v2436_v46 = vld [vmem:[%s2239_s14 + $0x90] sm:$0xff]  ;;  %v2454_v54 = vld [vmem:[%s2239_s14 + $0x98] sm:$0xff] }
  0x52   : > { %312 = vst [vmem:[#allocation2 + $0x207] sm:$0x1] %v2085_v0  ;;  %v699_v56 = vadd.f32 %v683_v45, %v650_v47  ;;  %962 = vmatpush.bf16.msra.mxu0 %v1765_v62  ;;  %v2429_v44 = vmul.f32 %v2324_v41, %v2393_v26  ;;  %v2433_v45 = vmul.f32 %v2324_v41, %v2396_v29 }
  0x53   : > { %313 = vst [vmem:[#allocation2 + $0x227] sm:$0x1] %v2085_v0  ;;  %v748_v58 = vadd.f32 %v732_v48, %v698_v55  ;;  %1779 = vmatpush.bf16.msra.mxu2 %v1765_v62  ;;  %v2440_v47 = vmul.f32 %v2280_v12, %v2415_v37  ;;  %v2444_v48 = vmul.f32 %v2288_v19, %v2418_v38 }
  0x54   : > { %314 = vst [vmem:[#allocation2 + $0x247] sm:$0x1] %v2085_v0  ;;  %v749_v59 = vadd.f32 %v733_v49, %v699_v56  ;;  %1518 = vmatpush.bf16.msra.mxu1 %v1765_v62  ;;  %1787 = vmatpush.bf16.msra.mxu3 %v1765_v62  ;;  %v2447_v49 = vld [vmem:[%s2239_s14 + $0xb0] sm:$0xff]  ;;  %v2458_v55 = vmul.f32 %v2288_v19, %v2421_v42 }
  0x55   : > { %315 = vst [vmem:[#allocation2 + $0x267] sm:$0x1] %v2085_v0  ;;  %v797_v63 = vadd.f32 %v781_v51, %v748_v58  ;;  %v2450_v51 = vld [vmem:[%s2239_s14 + $0xb8] sm:$0xff]  ;;  %v2462_v56 = vmul.f32 %v2324_v41, %v2436_v46  ;;  %v439_v62 = vmul.f32 %v2297_v27, %v2277_v10 }
  0x56   : > { %316 = vst [vmem:[#allocation2 + $0x287] sm:$0x1] %v2085_v0  ;;  %v798_v1 = vadd.f32 %v782_v57, %v749_v59  ;;  %963 = vmatpush.bf16.msra.mxu0 %v1764_v11  ;;  %v2466_v57 = vmul.f32 %v2280_v12, %v2447_v49  ;;  %v2470_v58 = vmul.f32 %v2280_v12, %v2450_v51  ;;  %v2474_v59 = vld [vmem:[%s2239_s14 + $0xc0] sm:$0xff] }
  0x57   : > { %317 = vst [vmem:[#allocation2 + $0x2a7] sm:$0x1] %v2085_v0  ;;  %v846_v7 = vadd.f32 %v830_v60, %v797_v63  ;;  %1780 = vmatpush.bf16.msra.mxu2 %v1764_v11  ;;  %v2477_v60 = vld [vmem:[%s2239_s14 + $0xc8] sm:$0xff]  ;;  %v440_v63 = vmul.f32 %v2300_v28, %v2277_v10 }
  0x58   : > { %318 = vst [vmem:[#allocation2 + $0x2c7] sm:$0x1] %v2085_v0  ;;  %v847_v8 = vadd.f32 %v831_v61, %v798_v1  ;;  %1519 = vmatpush.bf16.msra.mxu1 %v1764_v11  ;;  %1788 = vmatpush.bf16.msra.mxu3 %v1764_v11  ;;  %v2480_v61 = vld [vmem:[%s2239_s14 + $0xd0] sm:$0xff]  ;;  %v488_v1 = vmul.f32 %v2280_v12, %v2262_v3 }
  0x59   : > { %319 = vst [vmem:[#allocation2 + $0x2e7] sm:$0x1] %v2085_v0  ;;  %v865_v13 = vmul.f32 %v2358_v2, %v846_v7  ;;  %v489_v7 = vmul.f32 %v2280_v12, %v2266_v4  ;;  %v2497_v11 = vmul.f32 %v2288_v19, %v2474_v59  ;;  %v2501_v27 = vmul.f32 %v2288_v19, %v2477_v60  ;;  %v2511_v4 = vld [vmem:[%s2239_s14 + $0xd8] sm:$0xff] }
  0x5a   : > { %322 = vst [vmem:[#allocation2 + $0x158] sm:$0x1] %v2085_v0  ;;  %v866_v14 = vmul.f32 %v2358_v2, %v847_v8  ;;  %v2493_v8 = vmul.f32 %v2324_v41, %v2454_v54  ;;  %v2505_v3 = vmul.f32 %v2324_v41, %v2480_v61 }
  0x5b   : > { %323 = vst [vmem:[#allocation2 + $0x178] sm:$0x1] %v2085_v0  ;;  %v884_v16 = vadd.f32 %v2362_v9, %v865_v13  ;;  %v504_v13 = vadd.f32 %v488_v1, %v439_v62  ;;  %v2528_v62 = vmul.f32 %v2324_v41, %v2511_v4 }
  0x5c   : > { %324 = vst [vmem:[#allocation2 + $0x198] sm:$0x1] %v2085_v0  ;;  %v885_v17 = vadd.f32 %v2362_v9, %v866_v14  ;;  %v505_v14 = vadd.f32 %v489_v7, %v440_v63 }
  0x5d   : > { %325 = vst [vmem:[#allocation2 + $0x1b8] sm:$0x1] %v2085_v0 }
  0x5e   : > { %326 = vst [vmem:[#allocation2 + $0x1d8] sm:$0x1] %v2085_v0  ;;  %v900_v20 = vpack.c.bf16 %v885_v17, %v884_v16  ;;  %v537_v16 = vmul.f32 %v2306_v31, %v2282_v15  ;;  %v538_v17 = vmul.f32 %v2308_v32, %v2282_v15  ;;  %v2531_v31 = vmul.f32 %v2280_v12, %v344_v24 }
  0x5f   : > { %327 = vst [vmem:[#allocation2 + $0x1f8] sm:$0x1] %v2085_v0  ;;  %v2534_v32 = vmul.f32 %v2280_v12, %v345_v25 }
  0x60   : > { %328 = vst [vmem:[#allocation2 + $0x218] sm:$0x1] %v2085_v0  ;;  %964 = vmatmul.bf16.vlgmr.msra.gmra.mxu0 %v900_v20 }
  0x61   : > { %329 = vst [vmem:[#allocation2 + $0x238] sm:$0x1] %v2085_v0 }
  0x62   : > { %330 = vst [vmem:[#allocation2 + $0x258] sm:$0x1] %v2085_v0 }
  0x63   : > { %331 = vst [vmem:[#allocation2 + $0x278] sm:$0x1] %v2085_v0 }
  0x64   : > { %332 = vst [vmem:[#allocation2 + $0x298] sm:$0x1] %v2085_v0 }
  0x65   : > { %333 = vst [vmem:[#allocation2 + $0x2b8] sm:$0x1] %v2085_v0 }
  0x66   : > { %3416 = vst [vmem:[#allocation18_spill] sm:$0xff] %v2382_v21 }
  0x67   : > { %334 = vst [vmem:[#allocation2 + $0x2d8] sm:$0x1] %v2085_v0 }
  0x68   : > { %3417 = vst [vmem:[#allocation19_spill] sm:$0xff] %v2386_v22 }
  0x69   : > { %335 = vst [vmem:[#allocation2 + $0x2f8] sm:$0x1] %v2085_v0  ;;  %v2406_v0 = vmul.f32 %v2280_v12, %v2386_v22 }
  0x6a   : > { %374 = vst [vmem:[#allocation2 + $0x168] sm:$0xff] %v2382_v21 }
  0x6b   : > { %3418 = vst [vmem:[#allocation20_spill] sm:$0xff] %v2393_v26 }
  0x6c   : > { %3419 = vst [vmem:[#allocation21_spill] sm:$0xff] %v2396_v29 }
  0x6d   : > { %375 = vst [vmem:[#allocation2 + $0x170] sm:$0xff] %v2386_v22 }
  0x6e   : > { %3420 = vst [vmem:[#allocation22_spill] sm:$0xff] %v2402_v34 }
  0x6f   : > { %376 = vst [vmem:[#allocation2 + $0x188] sm:$0xff] %v344_v24 }
  0x70   : > { %3421 = vst [vmem:[#allocation23_spill] sm:$0xff] %v2415_v37 }
  0x71   : > { %3422 = vst [vmem:[#allocation24_spill] sm:$0xff] %v2418_v38  ;;  %v2507_v28 = vld [vmem:[#allocation2 + $0x167] sm:$0xff] }
  0x72   : > { %3423 = vst [vmem:[#allocation25_spill] sm:$0xff] %v2421_v42 }
  0x73   : > { %377 = vst [vmem:[#allocation2 + $0x190] sm:$0xff] %v345_v25 }
  0x74   : > { %3424 = vst [vmem:[#allocation26_spill] sm:$0xff] %v2436_v46  ;;  %v2517_v20 = vld [vmem:[#allocation2 + $0x16f] sm:$0xff] }
  0x75   : > { %3425 = vst [vmem:[#allocation27_spill] sm:$0xff] %v2447_v49  ;;  %v2521_v22 = vld [vmem:[#allocation2 + $0x169] sm:$0xff]  ;;  %v2523_v21 = vld [vmem:[#allocation2 + $0x171] sm:$0xff]  ;;  %v446_v63 = vmul.f32 %v2277_v10, %v2517_v20 }
  0x76   : > { %3426 = vst [vmem:[#allocation28_spill] sm:$0xff] %v2450_v51  ;;  %v543_v1 = vmul.f32 %v2282_v15, %v2521_v22  ;;  %v544_v7 = vmul.f32 %v2282_v15, %v2523_v21 }
  0x77   : > { %378 = vst [vmem:[#allocation2 + $0x1a8] sm:$0xff] %v2393_v26 }
  0x78   : > { %3427 = vst [vmem:[#allocation29_spill] sm:$0xff] %v2454_v54 }
  0x79   : > { %379 = vst [vmem:[#allocation2 + $0x1b0] sm:$0xff] %v2396_v29  ;;  %v511_v29 = vadd.f32 %v2406_v0, %v446_v63  ;;  %v587_v63 = vmul.f32 %v2322_v40, %v2286_v18 }
  0x7a   : > { %3428 = vst [vmem:[#allocation30_spill] sm:$0xff] %v2474_v59  ;;  %v2545_v24 = vld [vmem:[#allocation2 + $0x18f] sm:$0xff] }
  0x7b   : > { %3429 = vst [vmem:[#allocation31_spill] sm:$0xff] %v2477_v60  ;;  %v2549_v12 = vld [vmem:[#allocation2 + $0x189] sm:$0xff]  ;;  %v560_v26 = vadd.f32 %v544_v7, %v511_v29 }
  0x7c   : > { %3430 = vst [vmem:[#allocation32_spill] sm:$0xff] %v2480_v61 }
  0x7d   : > { %382 = vst [vmem:[#allocation2 + $0x1e8] sm:$0xff] %v2402_v34  ;;  %v445_v34 = vmul.f32 %v2277_v10, %v2507_v28 }
  0x7e   : > { %3431 = vst [vmem:[#allocation33_spill] sm:$0xff] %v2507_v28  ;;  %v553_v28 = vadd.f32 %v537_v16, %v504_v13  ;;  %v2563_v16 = vld [vmem:[#allocation2 + $0x1a7] sm:$0xff] }
  0x7f   : > { %383 = vst [vmem:[#allocation2 + $0x1f0] sm:$0xff] %v2415_v37  ;;  %v2542_v37 = vld [vmem:[#allocation2 + $0x187] sm:$0xff] }
  0x80   : > { %3432 = vst [vmem:[#allocation34_spill] sm:$0xff] %v2511_v4  ;;  %v592_v25 = vmul.f32 %v2286_v18, %v2542_v37  ;;  %v2570_v0 = vld [vmem:[#allocation2 + $0x1a9] sm:$0xff] }
  0x81   : > { %3433 = vst [vmem:[#allocation35_spill] sm:$0xff] %v2517_v20  ;;  %v2551_v20 = vld [vmem:[#allocation2 + $0x191] sm:$0xff] }
  0x82   : > { %3434 = vst [vmem:[#allocation36_spill] sm:$0xff] %v2521_v22  ;;  %v554_v22 = vadd.f32 %v538_v17, %v505_v14  ;;  %v691_v13 = vmul.f32 %v2294_v23, %v2551_v20  ;;  %v2566_v14 = vld [vmem:[#allocation2 + $0x1af] sm:$0xff] }
  0x83   : > { %3435 = vst [vmem:[#allocation37_spill] sm:$0xff] %v2523_v21  ;;  %v586_v21 = vmul.f32 %v2320_v39, %v2286_v18  ;;  %v740_v39 = vmul.f32 %v2310_v33, %v2563_v16  ;;  %v2572_v17 = vld [vmem:[#allocation2 + $0x1b1] sm:$0xff] }
  0x84   : > { %384 = vst [vmem:[#allocation2 + $0x208] sm:$0xff] %v2418_v38  ;;  %v510_v38 = vadd.f32 %v494_v30, %v445_v34  ;;  %v593_v30 = vmul.f32 %v2286_v18, %v2545_v24  ;;  %v690_v34 = vmul.f32 %v2294_v23, %v2549_v12 }
  0x85   : > { %3436 = vst [vmem:[#allocation38_spill] sm:$0xff] %v2534_v32 }
  0x86   : > { %385 = vst [vmem:[#allocation2 + $0x210] sm:$0xff] %v2421_v42  ;;  %v2577_v42 = vadd.f32 %v586_v21, %v553_v28  ;;  %v2592_v21 = vld [vmem:[#allocation2 + $0x1ef] sm:$0xff] }
  0x87   : > { %386 = vst [vmem:[#allocation2 + $0x228] sm:$0xff] %v2436_v46  ;;  %v559_v46 = vadd.f32 %v543_v1, %v510_v38  ;;  %v741_v38 = vmul.f32 %v2310_v33, %v2566_v14  ;;  %v2583_v1 = vmul.f32 %v2335_v50, %v2570_v0  ;;  %v2596_v28 = vld [vmem:[#allocation2 + $0x1e9] sm:$0xff]  ;;  %v2598_v7 = vld [vmem:[#allocation2 + $0x1f1] sm:$0xff] }
  0x88   : > { %3437 = vst [vmem:[#allocation39_spill] sm:$0xff] %v2563_v16  ;;  %v2589_v16 = vld [vmem:[#allocation2 + $0x1e7] sm:$0xff] }
  0x89   : > { %387 = vst [vmem:[#allocation2 + $0x230] sm:$0xff] %v2454_v54  ;;  %v2587_v54 = vmul.f32 %v2335_v50, %v2572_v17  ;;  %v608_v40 = vadd.f32 %v592_v25, %v559_v46  ;;  %v1054_v29 = vmul.f32 %v2589_v16, %v2277_v10  ;;  %v1055_v46 = vmul.f32 %v2592_v21, %v2277_v10 }
  0x8a   : > { %3438 = vst [vmem:[#allocation40_spill] sm:$0xff] %v2566_v14  ;;  %v1150_v25 = vmul.f32 %v2596_v28, %v2282_v15 }
  0x8b   : > { %3439 = vst [vmem:[#allocation41_spill] sm:$0xff] %v2570_v0  ;;  %v2613_v0 = vld [vmem:[#allocation2 + $0x207] sm:$0xff] }
  0x8c   : > { %3440 = vst [vmem:[#allocation42_spill] sm:$0xff] %v2572_v17  ;;  %v2605_v17 = vmul.f32 %v2288_v19, %v2269_v5  ;;  %v657_v5 = vadd.f32 %v2409_v35, %v608_v40  ;;  %v1119_v35 = vadd.f32 %v2440_v47, %v1055_v46 }
  0x8d   : > { %390 = vst [vmem:[#allocation2 + $0x268] sm:$0xff] %v2447_v49  ;;  %v2601_v49 = vadd.f32 %v587_v63, %v554_v22  ;;  %v2617_v22 = vld [vmem:[%s2239_s14 + $0x20] sm:$0xff]  ;;  %v2620_v63 = vld [vmem:[%s2239_s14 + $0x28] sm:$0xff] }
  0x8e   : > { %3441 = vst [vmem:[#allocation43_spill] sm:$0xff] %v2589_v16  ;;  %v1151_v16 = vmul.f32 %v2598_v7, %v2282_v15 }
  0x8f   : > { %391 = vst [vmem:[#allocation2 + $0x270] sm:$0xff] %v2450_v51  ;;  %v609_v51 = vadd.f32 %v593_v30, %v560_v26  ;;  %v1118_v26 = vadd.f32 %v2425_v43, %v1054_v29  ;;  %v2624_v30 = vld [vmem:[#allocation2 + $0x20f] sm:$0xff]  ;;  %v2643_v29 = vld [vmem:[#allocation2 + $0x227] sm:$0xff] }
  0x90   : > { %3442 = vst [vmem:[#allocation44_spill] sm:$0xff] %v2592_v21  ;;  %v2630_v21 = vld [vmem:[#allocation2 + $0x211] sm:$0xff]  ;;  %v1200_v43 = vmul.f32 %v2624_v30, %v2286_v18  ;;  %v1344_v46 = vmul.f32 %v2643_v29, %v2310_v33 }
  0x91   : > { %3443 = vst [vmem:[#allocation45_spill] sm:$0xff] %v2596_v28  ;;  %v1199_v28 = vmul.f32 %v2613_v0, %v2286_v18  ;;  %v1296_v47 = vmul.f32 %v2630_v21, %v2294_v23 }
  0x92   : > { %3444 = vst [vmem:[#allocation46_spill] sm:$0xff] %v2598_v7  ;;  %v2628_v7 = vld [vmem:[#allocation2 + $0x209] sm:$0xff] }
  0x93   : > { %392 = vst [vmem:[#allocation2 + $0x288] sm:$0xff] %v2474_v59  ;;  %v658_v59 = vadd.f32 %v2412_v36, %v609_v51  ;;  %v1295_v40 = vmul.f32 %v2628_v7, %v2294_v23  ;;  %v1166_v36 = vadd.f32 %v1150_v25, %v1118_v26  ;;  %v2654_v51 = vld [vmem:[#allocation2 + $0x22f] sm:$0xff]  ;;  %v2673_v26 = vld [vmem:[%s2239_s14 + $0xa0] sm:$0xff] }
  0x94   : > { %3445 = vst [vmem:[#allocation47_spill] sm:$0xff] %v2613_v0  ;;  %v2647_v0 = vld [vmem:[%s2239_s14 + $0x60] sm:$0xff] }
  0x95   : > { %393 = vst [vmem:[#allocation2 + $0x290] sm:$0xff] %v2477_v60  ;;  %v2635_v60 = vmul.f32 %v2288_v19, %v2272_v6  ;;  %v706_v6 = vadd.f32 %v690_v34, %v657_v5  ;;  %v1167_v19 = vadd.f32 %v1151_v16, %v1119_v35  ;;  %v1345_v34 = vmul.f32 %v2654_v51, %v2310_v33  ;;  %v2669_v5 = vld [vmem:[#allocation2 + $0x267] sm:$0xff] }
  0x96   : > { %3446 = vst [vmem:[#allocation48_spill] sm:$0xff] %v2624_v30  ;;  %v2660_v30 = vld [vmem:[#allocation2 + $0x231] sm:$0xff]  ;;  %v1215_v14 = vadd.f32 %v1199_v28, %v1166_v36  ;;  %v1062_v16 = vmul.f32 %v2669_v5, %v2277_v10  ;;  %v2686_v35 = vld [vmem:[#allocation2 + $0x269] sm:$0xff]  ;;  %v2699_v36 = vld [vmem:[%s2239_s14 + $0xe0] sm:$0xff] }
  0x97   : > { %3447 = vst [vmem:[#allocation49_spill] sm:$0xff] %v2628_v7  ;;  %v2658_v7 = vld [vmem:[#allocation2 + $0x229] sm:$0xff]  ;;  %v1216_v32 = vadd.f32 %v1200_v43, %v1167_v19  ;;  %v1158_v28 = vmul.f32 %v2686_v35, %v2282_v15 }
  0x98   : > { %3448 = vst [vmem:[#allocation50_spill] sm:$0xff] %v2630_v21  ;;  %v2667_v25 = vmul.f32 %v2335_v50, %v2658_v7  ;;  %v756_v21 = vadd.f32 %v740_v39, %v706_v6  ;;  %v2712_v43 = vld [vmem:[%s2239_s14 + $0xe8] sm:$0xff] }
  0x99   : > { %394 = vst [vmem:[#allocation2 + $0x2a8] sm:$0xff] %v2480_v61  ;;  %v2650_v61 = vld [vmem:[%s2239_s14 + $0x68] sm:$0xff] }
  0x9a   : > { %3449 = vst [vmem:[#allocation51_spill] sm:$0xff] %v2643_v29  ;;  %v2676_v29 = vld [vmem:[%s2239_s14 + $0xa8] sm:$0xff] }
  0x9b   : > { %395 = vst [vmem:[#allocation2 + $0x2b0] sm:$0xff] %v2511_v4  ;;  %v707_v4 = vadd.f32 %v691_v13, %v658_v59  ;;  %v2680_v59 = vmul.f32 %v2335_v50, %v2660_v30  ;;  %v2682_v13 = vld [vmem:[#allocation2 + $0x26f] sm:$0xff]  ;;  %v2695_v6 = vld [vmem:[#allocation2 + $0x287] sm:$0xff] }
  0x9c   : > { %3450 = vst [vmem:[#allocation52_spill] sm:$0xff] %v2647_v0  ;;  %v1063_v39 = vmul.f32 %v2682_v13, %v2277_v10 }
  0x9d   : > { %3451 = vst [vmem:[#allocation53_spill] sm:$0xff] %v2650_v61 }
  0x9e   : > { %3452 = vst [vmem:[#allocation54_spill] sm:$0xff] %v2654_v51  ;;  %v757_v51 = vadd.f32 %v741_v38, %v707_v4  ;;  %v2706_v4 = vld [vmem:[#allocation2 + $0x28f] sm:$0xff] }
  0x9f   : > { %3453 = vst [vmem:[#allocation55_spill] sm:$0xff] %v2658_v7  ;;  %v2688_v7 = vld [vmem:[#allocation2 + $0x271] sm:$0xff]  ;;  %v2708_v38 = vld [vmem:[#allocation2 + $0x289] sm:$0xff] }
  0xa0   : > { %3454 = vst [vmem:[#allocation56_spill] sm:$0xff] %v2660_v30  ;;  %v1263_v30 = vadd.f32 %v2444_v48, %v1215_v14  ;;  %v1159_v19 = vmul.f32 %v2688_v7, %v2282_v15  ;;  %v1207_v48 = vmul.f32 %v2695_v6, %v2286_v18 }
  0xa1   : > { %372 = vst [vmem:[#allocation2 + $0x148] sm:$0xff] %v2617_v22 }
  0xa2   : > { %3455 = vst [vmem:[#allocation57_spill] sm:$0xff] %v2669_v5  ;;  %v805_v5 = vadd.f32 %v2429_v44, %v756_v21  ;;  %v1127_v44 = vadd.f32 %v2470_v58, %v1063_v39  ;;  %v1311_v21 = vadd.f32 %v1295_v40, %v1263_v30  ;;  %v2742_v39 = vld [vmem:[#allocation2 + $0x2b1] sm:$0xff] }
  0xa3   : > { %373 = vst [vmem:[#allocation2 + $0x150] sm:$0xff] %v2620_v63 }
  0xa4   : > { %3456 = vst [vmem:[#allocation58_spill] sm:$0xff] %v2673_v26  ;;  %v854_v14 = vadd.f32 %v2583_v1, %v805_v5  ;;  %v1175_v58 = vadd.f32 %v1159_v19, %v1127_v44  ;;  %v1360_v1 = vadd.f32 %v1344_v46, %v1311_v21  ;;  %v2737_v5 = vld [vmem:[#allocation2 + $0x2a9] sm:$0xff] }
  0xa5   : > { %3457 = vst [vmem:[#allocation59_spill] sm:$0xff] %v2676_v29 }
  0xa6   : > { %3458 = vst [vmem:[#allocation60_spill] sm:$0xff] %v2682_v13  ;;  %v1264_v13 = vadd.f32 %v2458_v55, %v1216_v32  ;;  %v1303_v32 = vmul.f32 %v2708_v38, %v2294_v23  ;;  %v1408_v19 = vadd.f32 %v2462_v56, %v1360_v1  ;;  %v1449_v56 = vmul.f32 %v2335_v50, %v2742_v39 }
  0xa7   : > { %3459 = vst [vmem:[#allocation61_spill] sm:$0xff] %v2686_v35  ;;  %v806_v35 = vadd.f32 %v2433_v45, %v757_v51  ;;  %v2731_v51 = vld [vmem:[#allocation2 + $0x2af] sm:$0xff]  ;;  %v684_v1 = vmul.f32 %v2340_v52, %v2294_v23 }
  0xa8   : > { %3460 = vst [vmem:[#allocation62_spill] sm:$0xff] %v2688_v7  ;;  %v1208_v7 = vmul.f32 %v2706_v4, %v2286_v18  ;;  %v1312_v55 = vadd.f32 %v1296_v47, %v1264_v13  ;;  %v1353_v44 = vmul.f32 %v2731_v51, %v2310_v33  ;;  %v1456_v21 = vadd.f32 %v2667_v25, %v1408_v19 }
  0xa9   : > { %380 = vst [vmem:[#allocation2 + $0x1c8] sm:$0xff] %v2647_v0  ;;  %v1126_v0 = vadd.f32 %v2466_v57, %v1062_v16  ;;  %v2719_v57 = vld [vmem:[#allocation2 + $0x291] sm:$0xff]  ;;  %v855_v45 = vadd.f32 %v2587_v54, %v806_v35  ;;  %v784_v19 = vmul.f32 %v2324_v41, %v2620_v63 }
  0xaa   : > { %381 = vst [vmem:[#allocation2 + $0x1d0] sm:$0xff] %v2650_v61  ;;  %v1304_v40 = vmul.f32 %v2719_v57, %v2294_v23  ;;  %v1361_v47 = vadd.f32 %v1345_v34, %v1312_v55  ;;  %v1224_v13 = vadd.f32 %v1208_v7, %v1175_v58  ;;  %v1448_v34 = vmul.f32 %v2335_v50, %v2737_v5  ;;  %v2761_v55 = vld [vmem:[#allocation2 + $0x14f] sm:$0xff] }
  0xab   : > { %3461 = vst [vmem:[#allocation63_spill] sm:$0xff] %v2699_v36  ;;  %v1174_v16 = vadd.f32 %v1158_v28, %v1126_v0  ;;  %v873_v0 = vmul.f32 %v2358_v2, %v854_v14  ;;  %v874_v54 = vmul.f32 %v2358_v2, %v855_v45  ;;  %v2759_v45 = vld [vmem:[#allocation2 + $0x147] sm:$0xff]  ;;  %v1472_v25 = vmul.f32 %v2358_v2, %v1456_v21 }
  0xac   : > { %388 = vst [vmem:[#allocation2 + $0x248] sm:$0xff] %v2673_v26  ;;  %v2725_v26 = vld [vmem:[#allocation2 + $0x2a7] sm:$0xff]  ;;  %v1409_v14 = vadd.f32 %v2493_v8, %v1361_v47  ;;  %v1272_v7 = vadd.f32 %v2501_v27, %v1224_v13  ;;  %v2780_v13 = vld [vmem:[#allocation2 + $0x151] sm:$0xff] }
  0xad   : > { %3462 = vst [vmem:[#allocation64_spill] sm:$0xff] %v2712_v43  ;;  %v1223_v30 = vadd.f32 %v1207_v48, %v1174_v16  ;;  %v1352_v35 = vmul.f32 %v2725_v26, %v2310_v33  ;;  %v892_v28 = vadd.f32 %v2362_v9, %v873_v0  ;;  %v893_v48 = vadd.f32 %v2362_v9, %v874_v54 }
  0xae   : > { %389 = vst [vmem:[#allocation2 + $0x250] sm:$0xff] %v2676_v29  ;;  %v1457_v8 = vadd.f32 %v2680_v59, %v1409_v14  ;;  %v1320_v27 = vadd.f32 %v1304_v40, %v1272_v7  ;;  %v652_v0 = vadd.f32 %v2635_v60, %v2601_v49  ;;  %v734_v59 = vmul.f32 %v2310_v33, %v2759_v45  ;;  %v2776_v49 = vld [vmem:[#allocation2 + $0x149] sm:$0xff] }
  0xaf   : > { %396 = vst [vmem:[#allocation2 + $0x2c8] sm:$0xff] %v2699_v36  ;;  %v1271_v46 = vadd.f32 %v2497_v11, %v1223_v30  ;;  %v651_v11 = vadd.f32 %v2605_v17, %v2577_v42  ;;  %v904_v58 = vpack.c.bf16 %v893_v48, %v892_v28  ;;  %v685_v42 = vmul.f32 %v2342_v53, %v2294_v23 }
  0xb0   : > { %397 = vst [vmem:[#allocation2 + $0x2d0] sm:$0xff] %v2712_v43  ;;  %v1473_v17 = vmul.f32 %v2358_v2, %v1457_v8  ;;  %v1369_v30 = vadd.f32 %v1353_v44, %v1320_v27  ;;  %v735_v40 = vmul.f32 %v2310_v33, %v2761_v55  ;;  %v1488_v60 = vadd.f32 %v2362_v9, %v1472_v25 }
  0xb1   : > { %v1319_v16 = vadd.f32 %v1303_v32, %v1271_v46  ;;  %984 = vmatmul.bf16.vlgmr.msra.gmra.mxu2 %v904_v58  ;;  %v700_v52 = vadd.f32 %v684_v1, %v651_v11  ;;  %v701_v47 = vadd.f32 %v685_v42, %v652_v0  ;;  %v783_v28 = vmul.f32 %v2324_v41, %v2617_v22  ;;  %v3463_v1 = vld [vmem:[#allocation38_spill] sm:$0xff] }
  0xb2   : > { %v1489_v53 = vadd.f32 %v2362_v9, %v1473_v17  ;;  %v833_v21 = vmul.f32 %v2335_v50, %v2780_v13  ;;  %v546_v0 = vmul.f32 %v2551_v20, %v2282_v15 }
  0xb3   : > { %v1368_v32 = vadd.f32 %v1352_v35, %v1319_v16  ;;  %v1417_v35 = vadd.f32 %v2528_v62, %v1369_v30  ;;  %v750_v44 = vadd.f32 %v734_v59, %v700_v52  ;;  %v751_v48 = vadd.f32 %v735_v40, %v701_v47  ;;  %v3464_v30 = vld [vmem:[#allocation39_spill] sm:$0xff]  ;;  %v3467_v52 = vld [vmem:[#allocation17_spill] sm:$0xff] }
  0xb4   : > { %v1504_v14 = vpack.c.bf16 %v1489_v53, %v1488_v60  ;;  %v447_v62 = vmul.f32 %v2542_v37, %v2277_v10  ;;  %v594_v59 = vmul.f32 %v3464_v30, %v2286_v18  ;;  %v2814_v53 = vld [vmem:[#allocation2 + $0x1c7] sm:$0xff] }
  0xb5   : > { %v1416_v54 = vadd.f32 %v2505_v3, %v1368_v32  ;;  %v832_v3 = vmul.f32 %v2335_v50, %v2776_v49  ;;  %v1465_v7 = vadd.f32 %v1449_v56, %v1417_v35  ;;  %v799_v11 = vadd.f32 %v783_v28, %v750_v44  ;;  %3468 = vst [vmem:[#allocation38_spill] sm:$0xff] %v2814_v53  ;;  %v2816_v35 = vld [vmem:[#allocation2 + $0x1cf] sm:$0xff] }
  0xb6   : > { %v800_v58 = vadd.f32 %v784_v19, %v751_v48  ;;  %1520 = vmatmul.bf16.vlgmr.msra.gmra.mxu1 %v1504_v14  ;;  %v512_v27 = vadd.f32 %v2531_v31, %v447_v62  ;;  %v545_v56 = vmul.f32 %v2549_v12, %v2282_v15  ;;  %v3465_v31 = vld [vmem:[#allocation40_spill] sm:$0xff]  ;;  %3469 = vst [vmem:[#allocation39_spill] sm:$0xff] %v2816_v35  ;;  %v3471_v48 = vld [vmem:[#allocation41_spill] sm:$0xff]  ;;  %v2822_v14 = vld [vmem:[#allocation2 + $0x1c9] sm:$0xff] }
  0xb7   : > { %v1464_v46 = vadd.f32 %v1448_v34, %v1416_v54  ;;  %v448_v34 = vmul.f32 %v2545_v24, %v2277_v10  ;;  %v1481_v8 = vmul.f32 %v2358_v2, %v1465_v7  ;;  %v848_v25 = vadd.f32 %v832_v3, %v799_v11  ;;  %v3466_v54 = vld [vmem:[#allocation20_spill] sm:$0xff]  ;;  %3472 = vst [vmem:[#allocation40_spill] sm:$0xff] %v2822_v14 }
  0xb8   : > { %v849_v32 = vadd.f32 %v833_v21, %v800_v58  ;;  %v561_v24 = vadd.f32 %v545_v56, %v512_v27  ;;  %v595_v40 = vmul.f32 %v3465_v31, %v2286_v18  ;;  %v643_v47 = vmul.f32 %v3467_v52, %v3466_v54  ;;  %v2828_v58 = vld [vmem:[#allocation2 + $0x1d1] sm:$0xff] }
  0xb9   : > { %v1480_v16 = vmul.f32 %v2358_v2, %v1464_v46  ;;  %v513_v42 = vadd.f32 %v3463_v1, %v448_v34  ;;  %v1497_v17 = vadd.f32 %v2362_v9, %v1481_v8  ;;  %v867_v12 = vmul.f32 %v2358_v2, %v848_v25  ;;  %v3470_v46 = vld [vmem:[#allocation21_spill] sm:$0xff]  ;;  %3474 = vst [vmem:[#allocation20_spill] sm:$0xff] %v2828_v58  ;;  %v3475_v56 = vld [vmem:[#allocation52_spill] sm:$0xff] }
  0xba   : > { %v868_v60 = vmul.f32 %v2358_v2, %v849_v32  ;;  %v610_v19 = vadd.f32 %v594_v59, %v561_v24  ;;  %v644_v44 = vmul.f32 %v3467_v52, %v3470_v46  ;;  %v692_v3 = vmul.f32 %v3471_v48, %v2294_v23  ;;  %v3476_v24 = vld [vmem:[#allocation47_spill] sm:$0xff] }
  0xbb   : > { %v1496_v37 = vadd.f32 %v2362_v9, %v1480_v16  ;;  %v562_v20 = vadd.f32 %v546_v0, %v513_v42  ;;  %v886_v7 = vadd.f32 %v2362_v9, %v867_v12  ;;  %v3473_v16 = vld [vmem:[#allocation42_spill] sm:$0xff]  ;;  %v742_v8 = vmul.f32 %v2310_v33, %v2814_v53 }
  0xbc   : > { %v887_v21 = vadd.f32 %v2362_v9, %v868_v60  ;;  %v693_v11 = vmul.f32 %v3473_v16, %v2294_v23  ;;  %v659_v34 = vadd.f32 %v643_v47, %v610_v19  ;;  %v743_v27 = vmul.f32 %v2310_v33, %v2816_v35  ;;  %v3479_v47 = vld [vmem:[#allocation16_spill] sm:$0xff]  ;;  %v3480_v19 = vld [vmem:[#allocation25_spill] sm:$0xff]  ;;  %v2870_v53 = vld [vmem:[#allocation2 + $0x249] sm:$0xff] }
  0xbd   : > { %v1508_v28 = vpack.c.bf16 %v1497_v17, %v1496_v37  ;;  %v611_v62 = vadd.f32 %v595_v40, %v562_v20  ;;  %v791_v0 = vmul.f32 %v2324_v41, %v3475_v56  ;;  %v792_v32 = vmul.f32 %v2324_v41, %v2650_v61  ;;  %v3477_v40 = vld [vmem:[#allocation48_spill] sm:$0xff]  ;;  %v3485_v61 = vld [vmem:[#allocation26_spill] sm:$0xff]  ;;  %3490 = vst [vmem:[#allocation21_spill] sm:$0xff] %v2870_v53 }
  0xbe   : > { %v901_v37 = vpack.c.bf16 %v887_v21, %v886_v7  ;;  %v840_v1 = vmul.f32 %v2335_v50, %v2822_v14  ;;  %v708_v42 = vadd.f32 %v692_v3, %v659_v34  ;;  %v841_v17 = vmul.f32 %v2335_v50, %v2828_v58  ;;  %v3478_v20 = vld [vmem:[#allocation24_spill] sm:$0xff]  ;;  %v3481_v7 = vld [vmem:[#allocation49_spill] sm:$0xff] }
  0xbf   : > { %1540 = vmatmul.bf16.vlgmr.msra.gmra.mxu3 %v1508_v28  ;;  %v660_v25 = vadd.f32 %v644_v44, %v611_v62  ;;  %v1056_v59 = vmul.f32 %v3476_v24, %v2277_v10  ;;  %v1057_v12 = vmul.f32 %v3477_v40, %v2277_v10  ;;  %v1104_v28 = vmul.f32 %v3479_v47, %v3478_v20  ;;  %v3482_v62 = vld [vmem:[#allocation50_spill] sm:$0xff]  ;;  %v3483_v24 = vld [vmem:[#allocation51_spill] sm:$0xff]  ;;  %v3489_v35 = vld [vmem:[#allocation56_spill] sm:$0xff] }
  0xc0   : > { %969 = vmatmul.bf16.gmra.mxu0 %v901_v37  ;;  %v1105_v44 = vmul.f32 %v3479_v47, %v3480_v19  ;;  %v1152_v3 = vmul.f32 %v3481_v7, %v2282_v15  ;;  %v758_v21 = vadd.f32 %v742_v8, %v708_v42  ;;  %v1153_v34 = vmul.f32 %v3482_v62, %v2282_v15  ;;  %v3484_v40 = vld [vmem:[#allocation54_spill] sm:$0xff]  ;;  %v2862_v56 = vld [vmem:[#allocation2 + $0x24f] sm:$0xff]  ;;  %v3487_v42 = vld [vmem:[#allocation29_spill] sm:$0xff] }
  0xc1   : > { %v709_v60 = vadd.f32 %v693_v11, %v660_v25  ;;  %v1201_v58 = vmul.f32 %v3483_v24, %v2286_v18  ;;  %v1202_v37 = vmul.f32 %v3484_v40, %v2286_v18  ;;  %v2858_v11 = vld [vmem:[#allocation2 + $0x247] sm:$0xff]  ;;  %v1120_v20 = vadd.f32 %v1104_v28, %v1056_v59  ;;  %3486 = vst [vmem:[#allocation17_spill] sm:$0xff] %v2862_v56 }
  0xc2   : > { %v1121_v14 = vadd.f32 %v1105_v44, %v1057_v12  ;;  %v1249_v19 = vmul.f32 %v3467_v52, %v3485_v61  ;;  %v807_v8 = vadd.f32 %v791_v0, %v758_v21  ;;  %v1250_v7 = vmul.f32 %v3467_v52, %v3487_v42  ;;  %v3488_v62 = vld [vmem:[#allocation55_spill] sm:$0xff]  ;;  %v3492_v21 = vld [vmem:[#allocation58_spill] sm:$0xff] }
  0xc3   : > { %v759_v25 = vadd.f32 %v743_v27, %v709_v60  ;;  %v1297_v24 = vmul.f32 %v3488_v62, %v2294_v23  ;;  %v1298_v40 = vmul.f32 %v3489_v35, %v2294_v23  ;;  %v1168_v59 = vadd.f32 %v1152_v3, %v1120_v20  ;;  %v2874_v0 = vld [vmem:[#allocation2 + $0x251] sm:$0xff] }
  0xc4   : > { %v1169_v12 = vadd.f32 %v1153_v34, %v1121_v14  ;;  %v1346_v60 = vmul.f32 %v2858_v11, %v2310_v33  ;;  %3491 = vst [vmem:[#allocation41_spill] sm:$0xff] %v2874_v0  ;;  %v856_v28 = vadd.f32 %v840_v1, %v807_v8  ;;  %v1347_v44 = vmul.f32 %v2862_v56, %v2310_v33 }
  0xc5   : > { %v808_v27 = vadd.f32 %v792_v32, %v759_v25  ;;  %v1394_v62 = vmul.f32 %v2324_v41, %v3492_v21  ;;  %v1395_v35 = vmul.f32 %v2324_v41, %v2676_v29  ;;  %v1217_v3 = vadd.f32 %v1201_v58, %v1168_v59  ;;  %v2892_v21 = vld [vmem:[%s2239_s14 + $0xf0] sm:$0xff]  ;;  %v2895_v29 = vld [vmem:[%s2239_s14 + $0xf8] sm:$0xff] }
  0xc6   : > { %v1218_v25 = vadd.f32 %v1202_v37, %v1169_v12  ;;  %v1442_v14 = vmul.f32 %v2335_v50, %v2870_v53  ;;  %v875_v34 = vmul.f32 %v2358_v2, %v856_v28  ;;  %v1443_v1 = vmul.f32 %v2335_v50, %v2874_v0  ;;  %3493 = vst [vmem:[#allocation42_spill] sm:$0xff] %v2892_v21  ;;  %v3496_v28 = vld [vmem:[#allocation31_spill] sm:$0xff] }
  0xc7   : > { %v857_v32 = vadd.f32 %v841_v17, %v808_v27  ;;  %v1064_v20 = vmul.f32 %v2695_v6, %v2277_v10  ;;  %v1065_v8 = vmul.f32 %v2706_v4, %v2277_v10  ;;  %3494 = vst [vmem:[#allocation47_spill] sm:$0xff] %v2895_v29  ;;  %v1265_v17 = vadd.f32 %v1249_v19, %v1217_v3  ;;  %v3495_v27 = vld [vmem:[#allocation30_spill] sm:$0xff] }
  0xc8   : > { %v1266_v37 = vadd.f32 %v1250_v7, %v1218_v25  ;;  %v1112_v59 = vmul.f32 %v3479_v47, %v3495_v27  ;;  %398 = vst [vmem:[#allocation2 + $0x2e8] sm:$0xff] %v2892_v21  ;;  %v894_v12 = vadd.f32 %v2362_v9, %v875_v34  ;;  %v1113_v6 = vmul.f32 %v3479_v47, %v3496_v28  ;;  %v3497_v28 = vld [vmem:[#allocation32_spill] sm:$0xff]  ;;  %v2916_v21 = vld [vmem:[#allocation2 + $0x2c7] sm:$0xff] }
  0xc9   : > { %v876_v58 = vmul.f32 %v2358_v2, %v857_v32  ;;  %v1160_v4 = vmul.f32 %v2708_v38, %v2282_v15  ;;  %v1161_v0 = vmul.f32 %v2719_v57, %v2282_v15  ;;  %399 = vst [vmem:[#allocation2 + $0x2f0] sm:$0xff] %v2895_v29  ;;  %v1313_v7 = vadd.f32 %v1297_v24, %v1265_v17 }
  0xca   : > { %v1314_v32 = vadd.f32 %v1298_v40, %v1266_v37  ;;  %v1128_v3 = vadd.f32 %v1112_v59, %v1064_v20  ;;  %v1129_v25 = vadd.f32 %v1113_v6, %v1065_v8  ;;  %v1209_v34 = vmul.f32 %v2725_v26, %v2286_v18  ;;  %v3499_v40 = vld [vmem:[#allocation34_spill] sm:$0xff]  ;;  %v2930_v6 = vld [vmem:[#allocation2 + $0x2d1] sm:$0xff] }
  0xcb   : > { %v895_v19 = vadd.f32 %v2362_v9, %v876_v58  ;;  %v1210_v27 = vmul.f32 %v2731_v51, %v2286_v18  ;;  %v1257_v38 = vmul.f32 %v3467_v52, %v3497_v28  ;;  %v1362_v53 = vadd.f32 %v1346_v60, %v1313_v7  ;;  %v2918_v58 = vld [vmem:[#allocation2 + $0x2cf] sm:$0xff]  ;;  %3501 = vst [vmem:[#allocation16_spill] sm:$0xff] %v2930_v6 }
  0xcc   : > { %v1363_v29 = vadd.f32 %v1347_v44, %v1314_v32  ;;  %v1176_v56 = vadd.f32 %v1160_v4, %v1128_v3  ;;  %3498 = vst [vmem:[#allocation48_spill] sm:$0xff] %v2918_v58  ;;  %v1177_v24 = vadd.f32 %v1161_v0, %v1129_v25  ;;  %v1258_v20 = vmul.f32 %v3467_v52, %v3499_v40  ;;  %v2926_v37 = vld [vmem:[#allocation2 + $0x2c9] sm:$0xff] }
  0xcd   : > { %v905_v57 = vpack.c.bf16 %v895_v19, %v894_v12  ;;  %v1305_v8 = vmul.f32 %v2737_v5, %v2294_v23  ;;  %v1306_v17 = vmul.f32 %v2742_v39, %v2294_v23  ;;  %3500 = vst [vmem:[#allocation24_spill] sm:$0xff] %v2926_v37  ;;  %v1410_v59 = vadd.f32 %v1394_v62, %v1362_v53  ;;  %v424_v0 = vld [vmem:[#allocation2 + $0x127] sm:$0xff]  ;;  %v425_v4 = vld [vmem:[#allocation2 + $0x12f] sm:$0xff] }
  0xce   : > { %v1411_v12 = vadd.f32 %v1395_v35, %v1363_v29  ;;  %v1225_v60 = vadd.f32 %v1209_v34, %v1176_v56  ;;  %v1354_v44 = vmul.f32 %v2916_v21, %v2310_v33  ;;  %v1226_v19 = vadd.f32 %v1210_v27, %v1177_v24  ;;  %v473_v53 = vld [vmem:[#allocation2 + $0x128] sm:$0xff]  ;;  %v474_v25 = vld [vmem:[#allocation2 + $0x130] sm:$0xff] }
  0xcf   : > { %989 = vmatmul.bf16.gmra.mxu2 %v905_v57  ;;  %v1355_v7 = vmul.f32 %v2918_v58, %v2310_v33  ;;  %v1402_v32 = vmul.f32 %v2324_v41, %v2699_v36  ;;  %v1403_v3 = vmul.f32 %v2324_v41, %v2712_v43  ;;  %v1458_v29 = vadd.f32 %v1442_v14, %v1410_v59  ;;  %v522_v34 = vld [vmem:[#allocation2 + $0x129] sm:$0xff]  ;;  %v523_v57 = vld [vmem:[#allocation2 + $0x131] sm:$0xff] }
  0xd0   : > { %v1459_v35 = vadd.f32 %v1443_v1, %v1411_v12  ;;  %v1273_v56 = vadd.f32 %v1257_v38, %v1225_v60  ;;  %v1450_v62 = vmul.f32 %v2335_v50, %v2926_v37  ;;  %v1274_v27 = vadd.f32 %v1258_v20, %v1226_v19 }
  0xd1   : > { %v1451_v24 = vmul.f32 %v2335_v50, %v2930_v6  ;;  %v441_v58 = vmul.f32 %v2277_v10, %v424_v0  ;;  %v442_v36 = vmul.f32 %v2277_v10, %v425_v4  ;;  %v1474_v43 = vmul.f32 %v2358_v2, %v1458_v29 }
  0xd2   : > { %v1475_v14 = vmul.f32 %v2358_v2, %v1459_v35  ;;  %v1321_v1 = vadd.f32 %v1305_v8, %v1273_v56  ;;  %v490_v38 = vmul.f32 %v3479_v47, %v473_v53  ;;  %v1322_v59 = vadd.f32 %v1306_v17, %v1274_v27  ;;  %v3502_v27 = vld [vmem:[#allocation33_spill] sm:$0xff] }
  0xd3   : > { %v491_v12 = vmul.f32 %v3479_v47, %v474_v25  ;;  %v539_v60 = vmul.f32 %v2282_v15, %v522_v34  ;;  %v540_v20 = vmul.f32 %v2282_v15, %v523_v57  ;;  %v1490_v19 = vadd.f32 %v2362_v9, %v1474_v43 }
  0xd4   : > { %v1491_v0 = vadd.f32 %v2362_v9, %v1475_v14  ;;  %v1370_v6 = vadd.f32 %v1354_v44, %v1321_v1  ;;  %v506_v4 = vadd.f32 %v490_v38, %v441_v58  ;;  %v1371_v37 = vadd.f32 %v1355_v7, %v1322_v59  ;;  %v3503_v1 = vld [vmem:[#allocation35_spill] sm:$0xff] }
  0xd5   : > { %v507_v29 = vadd.f32 %v491_v12, %v442_v36  ;;  %v588_v8 = vmul.f32 %v2759_v45, %v2286_v18  ;;  %v589_v17 = vmul.f32 %v2761_v55, %v2286_v18  ;;  %v637_v25 = vmul.f32 %v3467_v52, %v2617_v22 }
  0xd6   : > { %v1505_v53 = vpack.c.bf16 %v1491_v0, %v1490_v19  ;;  %v1418_v35 = vadd.f32 %v1402_v32, %v1370_v6  ;;  %v555_v56 = vadd.f32 %v539_v60, %v506_v4  ;;  %v1419_v34 = vadd.f32 %v1403_v3, %v1371_v37  ;;  %v3504_v3 = vld [vmem:[#allocation18_spill] sm:$0xff]  ;;  %v3505_v60 = vld [vmem:[#allocation19_spill] sm:$0xff] }
  0xd7   : > { %v556_v43 = vadd.f32 %v540_v20, %v507_v29  ;;  %v638_v44 = vmul.f32 %v3467_v52, %v2620_v63  ;;  %v686_v36 = vmul.f32 %v2776_v49, %v2294_v23  ;;  %v687_v57 = vmul.f32 %v2780_v13, %v2294_v23  ;;  %v3506_v20 = vld [vmem:[#allocation36_spill] sm:$0xff] }
  0xd8   : > { %1525 = vmatmul.bf16.gmra.mxu1 %v1505_v53  ;;  %v1466_v58 = vadd.f32 %v1450_v62, %v1418_v35  ;;  %v604_v7 = vadd.f32 %v588_v8, %v555_v56  ;;  %v736_v6 = vmul.f32 %v2310_v33, %v3502_v27  ;;  %v1467_v32 = vadd.f32 %v1451_v24, %v1419_v34  ;;  %v3507_v24 = vld [vmem:[#allocation37_spill] sm:$0xff] }
  0xd9   : > { %v605_v14 = vadd.f32 %v589_v17, %v556_v43  ;;  %v737_v37 = vmul.f32 %v2310_v33, %v3503_v1  ;;  %v785_v38 = vmul.f32 %v2324_v41, %v3504_v3  ;;  %v786_v62 = vmul.f32 %v2324_v41, %v3505_v60 }
  0xda   : > { %v1482_v59 = vmul.f32 %v2358_v2, %v1466_v58  ;;  %v653_v12 = vadd.f32 %v637_v25, %v604_v7  ;;  %v834_v19 = vmul.f32 %v2335_v50, %v3506_v20  ;;  %v1483_v0 = vmul.f32 %v2358_v2, %v1467_v32  ;;  %v3508_v58 = vld [vmem:[#allocation38_spill] sm:$0xff]  ;;  %v3509_v32 = vld [vmem:[#allocation39_spill] sm:$0xff] }
  0xdb   : > { %v654_v4 = vadd.f32 %v638_v44, %v605_v14  ;;  %v835_v29 = vmul.f32 %v2335_v50, %v3507_v24  ;;  %v449_v8 = vmul.f32 %v3464_v30, %v2277_v10  ;;  %v450_v35 = vmul.f32 %v3465_v31, %v2277_v10 }
  0xdc   : > { %v1498_v17 = vadd.f32 %v2362_v9, %v1482_v59  ;;  %v702_v53 = vadd.f32 %v686_v36, %v653_v12  ;;  %v498_v56 = vmul.f32 %v3479_v47, %v3466_v54  ;;  %v1499_v25 = vadd.f32 %v2362_v9, %v1483_v0  ;;  %v3512_v12 = vld [vmem:[#allocation40_spill] sm:$0xff] }
  0xdd   : > { %v703_v34 = vadd.f32 %v687_v57, %v654_v4  ;;  %v499_v43 = vmul.f32 %v3479_v47, %v3470_v46  ;;  %v547_v50 = vmul.f32 %v3471_v48, %v2282_v15  ;;  %v548_v36 = vmul.f32 %v3473_v16, %v2282_v15  ;;  %v3510_v46 = vld [vmem:[#allocation52_spill] sm:$0xff]  ;;  %v3511_v48 = vld [vmem:[#allocation53_spill] sm:$0xff] }
  0xde   : > { %v752_v44 = vadd.f32 %v736_v6, %v702_v53  ;;  %v514_v30 = vadd.f32 %v498_v56, %v449_v8  ;;  %v596_v31 = vmul.f32 %v3508_v58, %v2286_v18  ;;  %v1509_v7 = vpack.c.bf16 %v1499_v25, %v1498_v17  ;;  %v3515_v8 = vld [vmem:[#allocation44_spill] sm:$0xff]  ;;  %v3516_v56 = vld [vmem:[#allocation22_spill] sm:$0xff]  ;;  %v3517_v25 = vld [vmem:[#allocation23_spill] sm:$0xff] }
  0xdf   : > { %v753_v27 = vadd.f32 %v737_v37, %v703_v34  ;;  %v515_v54 = vadd.f32 %v499_v43, %v450_v35  ;;  %v597_v57 = vmul.f32 %v3509_v32, %v2286_v18  ;;  %v645_v3 = vmul.f32 %v3467_v52, %v3510_v46  ;;  %v3513_v37 = vld [vmem:[#allocation20_spill] sm:$0xff] }
  0xe0   : > { %v801_v14 = vadd.f32 %v785_v38, %v752_v44  ;;  %v563_v1 = vadd.f32 %v547_v50, %v514_v30  ;;  %v646_v6 = vmul.f32 %v3467_v52, %v3511_v48  ;;  %1545 = vmatmul.bf16.gmra.mxu3 %v1509_v7  ;;  %v694_v60 = vmul.f32 %v3512_v12, %v2294_v23  ;;  %v3514_v38 = vld [vmem:[#allocation43_spill] sm:$0xff]  ;;  %v3013_v44 = vld [vmem:[#allocation6 + $0x8] ss:$0 sm:$0xff] }
  0xe1   : > { %v802_v59 = vadd.f32 %v786_v62, %v753_v27  ;;  %v564_v16 = vadd.f32 %v548_v36, %v515_v54  ;;  %v695_v20 = vmul.f32 %v3513_v37, %v2294_v23  ;;  %v744_v24 = vmul.f32 %v3514_v38, %v2310_v33  ;;  %v3519_v36 = vld [vmem:[#allocation46_spill] sm:$0xff]  ;;  %v3520_v27 = vld [vmem:[#allocation51_spill] sm:$0xff]  ;;  %v3523_v38 = vld [vmem:[#allocation56_spill] sm:$0xff] }
  0xe2   : > { %v850_v0 = vadd.f32 %v834_v19, %v801_v14  ;;  %v612_v4 = vadd.f32 %v596_v31, %v563_v1  ;;  %v745_v17 = vmul.f32 %v3515_v8, %v2310_v33  ;;  %v793_v62 = vmul.f32 %v2324_v41, %v3516_v56  ;;  %v3518_v19 = vld [vmem:[#allocation45_spill] sm:$0xff] }
  0xe3   : > { %v851_v53 = vadd.f32 %v835_v29, %v802_v59  ;;  %v613_v35 = vadd.f32 %v597_v57, %v564_v16  ;;  %v794_v34 = vmul.f32 %v2324_v41, %v3517_v25  ;;  %v842_v30 = vmul.f32 %v3013_v44, %v3518_v19  ;;  %v3521_v57 = vld [vmem:[#allocation54_spill] sm:$0xff] }
  0xe4   : > { %v869_v43 = vmul.f32 %v2358_v2, %v850_v0  ;;  %v661_v50 = vadd.f32 %v645_v3, %v612_v4  ;;  %v843_v31 = vmul.f32 %v3013_v44, %v3519_v36  ;;  %v1058_v54 = vmul.f32 %v3520_v27, %v2277_v10  ;;  %v3527_v27 = vld [vmem:[#allocation21_spill] sm:$0xff] }
  0xe5   : > { %v870_v29 = vmul.f32 %v2358_v2, %v851_v53  ;;  %v662_v7 = vadd.f32 %v646_v6, %v613_v35  ;;  %v1059_v14 = vmul.f32 %v3521_v57, %v2277_v10  ;;  %v1106_v59 = vmul.f32 %v3479_v47, %v3485_v61  ;;  %v3522_v2 = vld [vmem:[#allocation55_spill] sm:$0xff]  ;;  %v3528_v57 = vld [vmem:[#allocation41_spill] sm:$0xff] }
  0xe6   : > { %v888_v1 = vadd.f32 %v2362_v9, %v869_v43  ;;  %v710_v3 = vadd.f32 %v694_v60, %v661_v50  ;;  %v1107_v16 = vmul.f32 %v3479_v47, %v3487_v42  ;;  %v1154_v6 = vmul.f32 %v3522_v2, %v2282_v15  ;;  %v3524_v43 = vld [vmem:[#allocation17_spill] sm:$0xff]  ;;  %v3525_v50 = vld [vmem:[#allocation58_spill] sm:$0xff]  ;;  %v3531_v2 = vld [vmem:[#allocation27_spill] sm:$0xff] }
  0xe7   : > { %v889_v0 = vadd.f32 %v2362_v9, %v870_v29  ;;  %v711_v4 = vadd.f32 %v695_v20, %v662_v7  ;;  %v1155_v8 = vmul.f32 %v3523_v38, %v2282_v15  ;;  %v1122_v35 = vadd.f32 %v1106_v59, %v1058_v54  ;;  %v3526_v29 = vld [vmem:[#allocation59_spill] sm:$0xff] }
  0xe8   : > { %v760_v53 = vadd.f32 %v744_v24, %v710_v3  ;;  %v1123_v56 = vadd.f32 %v1107_v16, %v1059_v14  ;;  %v1203_v60 = vmul.f32 %v2858_v11, %v2286_v18  ;;  %v1204_v42 = vmul.f32 %v3524_v43, %v2286_v18  ;;  %v3529_v14 = vld [vmem:[#allocation57_spill] sm:$0xff] }
  0xe9   : > { %v902_v25 = vpack.c.bf16 %v889_v0, %v888_v1  ;;  %v761_v61 = vadd.f32 %v745_v17, %v711_v4  ;;  %v1251_v9 = vmul.f32 %v3467_v52, %v3525_v50  ;;  %v1170_v19 = vadd.f32 %v1154_v6, %v1122_v35  ;;  %v3059_v35 = vld [vmem:[%s3308_s2] ss:$0 sm:$0xff] }
  0xea   : > { %v809_v20 = vadd.f32 %v793_v62, %v760_v53  ;;  %v1171_v36 = vadd.f32 %v1155_v8, %v1123_v56  ;;  %v1252_v7 = vmul.f32 %v3467_v52, %v3526_v29  ;;  %v1299_v54 = vmul.f32 %v3527_v27, %v2294_v23  ;;  %v3530_v62 = vld [vmem:[#allocation60_spill] sm:$0xff]  ;;  %v3533_v8 = vld [vmem:[#allocation61_spill] sm:$0xff] }
  0xeb   : > { %974 = vmatmul.bf16.gmra.mxu0 %v902_v25  ;;  %v810_v24 = vadd.f32 %v794_v34, %v761_v61  ;;  %v1300_v17 = vmul.f32 %v3528_v57, %v2294_v23  ;;  %v1348_v1 = vmul.f32 %v3529_v14, %v2310_v33  ;;  %v1219_v59 = vadd.f32 %v1203_v60, %v1170_v19  ;;  %v3532_v34 = vld [vmem:[#allocation28_spill] sm:$0xff]  ;;  %v3534_v25 = vld [vmem:[#allocation62_spill] sm:$0xff] }
  0xec   : > { %v858_v3 = vadd.f32 %v842_v30, %v809_v20  ;;  %v1220_v16 = vadd.f32 %v1204_v42, %v1171_v36  ;;  %v1349_v0 = vmul.f32 %v3530_v62, %v2310_v33  ;;  %v1396_v6 = vmul.f32 %v2324_v41, %v3531_v2  ;;  %v3071_v36 = vld [vmem:[#allocation8] ss:$0 sm:$0xff] }
  0xed   : > { %v859_v4 = vadd.f32 %v843_v31, %v810_v24  ;;  %v1397_v38 = vmul.f32 %v2324_v41, %v3532_v34  ;;  %v1444_v53 = vmul.f32 %v3013_v44, %v3533_v8  ;;  %v1267_v56 = vadd.f32 %v1251_v9, %v1219_v59  ;;  %v3536_v8 = vld [vmem:[#allocation63_spill] sm:$0xff] }
  0xee   : > { %v877_v30 = vmul.f32 %v3059_v35, %v858_v3  ;;  %v1268_v60 = vadd.f32 %v1252_v7, %v1220_v16  ;;  %v1445_v31 = vmul.f32 %v3013_v44, %v3534_v25  ;;  %v1066_v42 = vmul.f32 %v2725_v26, %v2277_v10  ;;  %v3093_v25 = vld [vmem:[#allocation2 + $0x2e9] sm:$0xff] }
  0xef   : > { %v878_v61 = vmul.f32 %v3059_v35, %v859_v4  ;;  %v1067_v20 = vmul.f32 %v2731_v51, %v2277_v10  ;;  %v1114_v19 = vmul.f32 %v3479_v47, %v3497_v28  ;;  %v1315_v9 = vadd.f32 %v1299_v54, %v1267_v56  ;;  %v3083_v54 = vld [vmem:[#allocation2 + $0x2e7] sm:$0xff]  ;;  %3538 = vst [vmem:[#allocation25_spill] sm:$0xff] %v3093_v25 }
  0xf0   : > { %v896_v24 = vadd.f32 %v3071_v36, %v877_v30  ;;  %v1316_v7 = vadd.f32 %v1300_v17, %v1268_v60  ;;  %v1115_v14 = vmul.f32 %v3479_v47, %v3499_v40  ;;  %v1162_v26 = vmul.f32 %v2737_v5, %v2282_v15  ;;  %v3535_v40 = vld [vmem:[#allocation48_spill] sm:$0xff] }
  0xf1   : > { %v897_v3 = vadd.f32 %v3071_v36, %v878_v61  ;;  %v1130_v59 = vadd.f32 %v1114_v19, %v1066_v42  ;;  %v1163_v51 = vmul.f32 %v2742_v39, %v2282_v15  ;;  %v1364_v16 = vadd.f32 %v1348_v1, %v1315_v9  ;;  %v3089_v5 = vld [vmem:[#allocation2 + $0x2ef] sm:$0xff] }
  0xf2   : > { %v1365_v28 = vadd.f32 %v1349_v0, %v1316_v7  ;;  %v1131_v62 = vadd.f32 %v1115_v14, %v1067_v20  ;;  %v1211_v4 = vmul.f32 %v2916_v21, %v2286_v18  ;;  %v1212_v34 = vmul.f32 %v3535_v40, %v2286_v18  ;;  %v3537_v0 = vld [vmem:[#allocation64_spill] sm:$0xff] }
  0xf3   : > { %v906_v17 = vpack.c.bf16 %v897_v3, %v896_v24  ;;  %v1178_v2 = vadd.f32 %v1162_v26, %v1130_v59  ;;  %v1259_v30 = vmul.f32 %v3467_v52, %v3536_v8  ;;  %v1412_v56 = vadd.f32 %v1396_v6, %v1364_v16  ;;  %v3539_v42 = vld [vmem:[#allocation24_spill] sm:$0xff]  ;;  %v3542_v26 = vld [vmem:[#allocation42_spill] sm:$0xff]  ;;  %v3543_v16 = vld [vmem:[#allocation47_spill] sm:$0xff] }
  0xf4   : > { %v1413_v39 = vadd.f32 %v1397_v38, %v1365_v28  ;;  %v1179_v1 = vadd.f32 %v1163_v51, %v1131_v62  ;;  %v1260_v60 = vmul.f32 %v3467_v52, %v3537_v0  ;;  %v1307_v20 = vmul.f32 %v3539_v42, %v2294_v23  ;;  %v3540_v19 = vld [vmem:[#allocation16_spill] sm:$0xff] }
  0xf5   : > { %994 = vmatmul.bf16.gmra.mxu2 %v906_v17  ;;  %v1227_v61 = vadd.f32 %v1211_v4, %v1178_v2  ;;  %v1308_v24 = vmul.f32 %v3540_v19, %v2294_v23  ;;  %v1356_v9 = vmul.f32 %v3083_v54, %v2310_v33  ;;  %v3101_v7 = vld [vmem:[#allocation2 + $0x2f1] sm:$0xff]  ;;  %v1460_v6 = vadd.f32 %v1444_v53, %v1412_v56  ;;  %v573_v56 = vld [vmem:[#allocation2 + $0x167] sm:$0xff] }
  0xf6   : > { %3541 = vst [vmem:[#allocation49_spill] sm:$0xff] %v3101_v7  ;;  %v1461_v38 = vadd.f32 %v1445_v31, %v1413_v39  ;;  %v1228_v14 = vadd.f32 %v1212_v34, %v1179_v1  ;;  %v1357_v3 = vmul.f32 %v3089_v5, %v2310_v33  ;;  %v1404_v51 = vmul.f32 %v2324_v41, %v3542_v26 }
  0xf7   : > { %v1275_v59 = vadd.f32 %v1259_v30, %v1227_v61  ;;  %v1405_v28 = vmul.f32 %v2324_v41, %v3543_v16  ;;  %v1452_v62 = vmul.f32 %v3013_v44, %v3093_v25  ;;  %v1476_v4 = vmul.f32 %v3059_v35, %v1460_v6  ;;  %v574_v61 = vld [vmem:[#allocation2 + $0x16f] sm:$0xff] }
  0xf8   : > { %v1477_v17 = vmul.f32 %v3059_v35, %v1461_v38  ;;  %v1276_v53 = vadd.f32 %v1260_v60, %v1228_v14  ;;  %v1453_v31 = vmul.f32 %v3013_v44, %v3101_v7  ;;  %v443_v34 = vmul.f32 %v2759_v45, %v2277_v10  ;;  %v671_v14 = vld [vmem:[#allocation2 + $0x169] sm:$0xff] }
  0xf9   : > { %v1323_v2 = vadd.f32 %v1307_v20, %v1275_v59  ;;  %v444_v8 = vmul.f32 %v2761_v55, %v2277_v10  ;;  %v492_v30 = vmul.f32 %v3479_v47, %v2617_v22  ;;  %v1492_v39 = vadd.f32 %v3071_v36, %v1476_v4  ;;  %v622_v20 = vld [vmem:[#allocation2 + $0x168] sm:$0xff]  ;;  %v623_v22 = vld [vmem:[#allocation2 + $0x170] sm:$0xff] }
  0xfa   : > { %v1493_v1 = vadd.f32 %v3071_v36, %v1477_v17  ;;  %v1324_v0 = vadd.f32 %v1308_v24, %v1276_v53  ;;  %v493_v60 = vmul.f32 %v3479_v47, %v2620_v63  ;;  %v541_v45 = vmul.f32 %v2776_v49, %v2282_v15  ;;  %v672_v17 = vld [vmem:[#allocation2 + $0x171] sm:$0xff]  ;;  %v721_v53 = vld [vmem:[#allocation2 + $0x187] sm:$0xff] }
  0xfb   : > { %v1372_v6 = vadd.f32 %v1356_v9, %v1323_v2  ;;  %v508_v38 = vadd.f32 %v492_v30, %v443_v34  ;;  %v542_v55 = vmul.f32 %v2780_v13, %v2282_v15  ;;  %v590_v24 = vmul.f32 %v2286_v18, %v573_v56  ;;  %v722_v34 = vld [vmem:[#allocation2 + $0x18f] sm:$0xff] }
  0xfc   : > { %v1506_v59 = vpack.c.bf16 %v1493_v1, %v1492_v39  ;;  %v1373_v4 = vadd.f32 %v1357_v3, %v1324_v0  ;;  %v509_v7 = vadd.f32 %v493_v60, %v444_v8  ;;  %v591_v9 = vmul.f32 %v2286_v18, %v574_v61  ;;  %v770_v49 = vld [vmem:[#allocation2 + $0x188] sm:$0xff]  ;;  %v771_v8 = vld [vmem:[#allocation2 + $0x190] sm:$0xff] }
  0xfd   : > { %v1420_v63 = vadd.f32 %v1404_v51, %v1372_v6  ;;  %v557_v25 = vadd.f32 %v541_v45, %v508_v38  ;;  %v639_v2 = vmul.f32 %v3467_v52, %v622_v20  ;;  %v640_v16 = vmul.f32 %v3467_v52, %v623_v22  ;;  %v819_v39 = vld [vmem:[#allocation2 + $0x189] sm:$0xff]  ;;  %v820_v60 = vld [vmem:[#allocation2 + $0x191] sm:$0xff] }
  0xfe   : > { %1530 = vmatmul.bf16.gmra.mxu1 %v1506_v59  ;;  %v1421_v30 = vadd.f32 %v1405_v28, %v1373_v4  ;;  %v558_v13 = vadd.f32 %v542_v55, %v509_v7  ;;  %v688_v3 = vmul.f32 %v2294_v23, %v671_v14  ;;  %v689_v51 = vmul.f32 %v2294_v23, %v672_v17  ;;  %v581_v14 = vld [vmem:[#allocation2 + $0x1e7] sm:$0xff] }
  0xff   : > { %v1468_v56 = vadd.f32 %v1452_v62, %v1420_v63  ;;  %v606_v1 = vadd.f32 %v590_v24, %v557_v25  ;;  %v738_v0 = vmul.f32 %v2310_v33, %v721_v53  ;;  %v739_v6 = vmul.f32 %v2310_v33, %v722_v34  ;;  %v582_v53 = vld [vmem:[#allocation2 + $0x1ef] sm:$0xff] }
 0x100   : > { %v1469_v61 = vadd.f32 %v1453_v31, %v1421_v30  ;;  %v607_v20 = vadd.f32 %v591_v9, %v558_v13  ;;  %v787_v28 = vmul.f32 %v2324_v41, %v770_v49  ;;  %v788_v45 = vmul.f32 %v2324_v41, %v771_v8  ;;  %v631_v34 = vld [vmem:[#allocation2 + $0x1f0] sm:$0xff] }
 0x101   : > { %v1484_v7 = vmul.f32 %v3059_v35, %v1468_v56  ;;  %v655_v38 = vadd.f32 %v639_v2, %v606_v1  ;;  %v836_v55 = vmul.f32 %v3013_v44, %v819_v39  ;;  %v837_v22 = vmul.f32 %v3013_v44, %v820_v60  ;;  %v630_v2 = vld [vmem:[#allocation2 + $0x1e8] sm:$0xff] }
 0x102   : > { %v1485_v25 = vmul.f32 %v3059_v35, %v1469_v61  ;;  %v656_v62 = vadd.f32 %v640_v16, %v607_v20  ;;  %v451_v31 = vmul.f32 %v3508_v58, %v2277_v10  ;;  %v452_v24 = vmul.f32 %v3509_v32, %v2277_v10  ;;  %v778_v20 = vld [vmem:[#allocation2 + $0x208] sm:$0xff] }
 0x103   : > { %v1500_v59 = vadd.f32 %v3071_v36, %v1484_v7  ;;  %v704_v4 = vadd.f32 %v688_v3, %v655_v38  ;;  %v500_v17 = vmul.f32 %v3479_v47, %v3510_v46  ;;  %v501_v16 = vmul.f32 %v3479_v47, %v3511_v48  ;;  %v679_v46 = vld [vmem:[#allocation2 + $0x1e9] sm:$0xff]  ;;  %v680_v3 = vld [vmem:[#allocation2 + $0x1f1] sm:$0xff] }
 0x104   : > { %v1501_v63 = vadd.f32 %v3071_v36, %v1485_v25  ;;  %v705_v9 = vadd.f32 %v689_v51, %v656_v62  ;;  %v549_v58 = vmul.f32 %v3512_v12, %v2282_v15  ;;  %v550_v32 = vmul.f32 %v3513_v37, %v2282_v15  ;;  %v729_v48 = vld [vmem:[#allocation2 + $0x207] sm:$0xff]  ;;  %v730_v51 = vld [vmem:[#allocation2 + $0x20f] sm:$0xff] }
 0x105   : > { %v754_v49 = vadd.f32 %v738_v0, %v704_v4  ;;  %v516_v30 = vadd.f32 %v500_v17, %v451_v31  ;;  %v598_v13 = vmul.f32 %v2286_v18, %v581_v14  ;;  %v517_v56 = vadd.f32 %v501_v16, %v452_v24  ;;  %v779_v7 = vld [vmem:[#allocation2 + $0x210] sm:$0xff] }
 0x106   : > { %v1510_v8 = vpack.c.bf16 %v1501_v63, %v1500_v59  ;;  %v755_v39 = vadd.f32 %v739_v6, %v705_v9  ;;  %v599_v1 = vmul.f32 %v2286_v18, %v582_v53  ;;  %v647_v61 = vmul.f32 %v3467_v52, %v630_v2  ;;  %v827_v62 = vld [vmem:[#allocation2 + $0x209] sm:$0xff]  ;;  %v828_v31 = vld [vmem:[#allocation2 + $0x211] sm:$0xff] }
 0x107   : > { %v803_v60 = vadd.f32 %v787_v28, %v754_v49  ;;  %v565_v12 = vadd.f32 %v549_v58, %v516_v30  ;;  %v648_v0 = vmul.f32 %v3467_v52, %v631_v34  ;;  %v566_v38 = vadd.f32 %v550_v32, %v517_v56  ;;  %v1189_v49 = vld [vmem:[#allocation2 + $0x267] sm:$0xff] }
 0x108   : > { %1550 = vmatmul.bf16.gmra.mxu3 %v1510_v8  ;;  %v804_v37 = vadd.f32 %v788_v45, %v755_v39  ;;  %v696_v25 = vmul.f32 %v2294_v23, %v679_v46  ;;  %v697_v6 = vmul.f32 %v2294_v23, %v680_v3  ;;  %v746_v28 = vmul.f32 %v2310_v33, %v729_v48  ;;  %v1190_v3 = vld [vmem:[#allocation2 + $0x26f] sm:$0xff] }
 0x109   : > { %v852_v14 = vadd.f32 %v836_v55, %v803_v60  ;;  %v614_v59 = vadd.f32 %v598_v13, %v565_v12  ;;  %v747_v4 = vmul.f32 %v2310_v33, %v730_v51  ;;  %v615_v17 = vadd.f32 %v599_v1, %v566_v38  ;;  %v1237_v8 = vld [vmem:[#allocation2 + $0x268] sm:$0xff]  ;;  %v1238_v1 = vld [vmem:[#allocation2 + $0x270] sm:$0xff] }
 0x10a   : > { %v853_v24 = vadd.f32 %v837_v22, %v804_v37  ;;  %v795_v53 = vmul.f32 %v2324_v41, %v778_v20  ;;  %v796_v63 = vmul.f32 %v2324_v41, %v779_v7  ;;  %v844_v16 = vmul.f32 %v3013_v44, %v827_v62  ;;  %v1285_v12 = vld [vmem:[#allocation2 + $0x269] sm:$0xff] }
 0x10b   : > { %v871_v45 = vmul.f32 %v3059_v35, %v852_v14  ;;  %v663_v9 = vadd.f32 %v647_v61, %v614_v59  ;;  %v845_v58 = vmul.f32 %v3013_v44, %v828_v31  ;;  %v664_v2 = vadd.f32 %v648_v0, %v615_v17  ;;  %v1286_v61 = vld [vmem:[#allocation2 + $0x271] sm:$0xff]  ;;  %v1382_v62 = vld [vmem:[#allocation2 + $0x288] sm:$0xff] }
 0x10c   : > { %v872_v55 = vmul.f32 %v3059_v35, %v853_v24  ;;  %v1060_v34 = vmul.f32 %v2858_v11, %v2277_v10  ;;  %v1061_v22 = vmul.f32 %v3524_v43, %v2277_v10  ;;  %v1108_v13 = vmul.f32 %v3479_v47, %v3525_v50  ;;  %v1335_v38 = vld [vmem:[#allocation2 + $0x28f] sm:$0xff] }
 0x10d   : > { %v890_v30 = vadd.f32 %v3071_v36, %v871_v45  ;;  %v712_v32 = vadd.f32 %v696_v25, %v663_v9  ;;  %v1109_v46 = vmul.f32 %v3479_v47, %v3526_v29  ;;  %v713_v56 = vadd.f32 %v697_v6, %v664_v2  ;;  %v1334_v29 = vld [vmem:[#allocation2 + $0x287] sm:$0xff]  ;;  %v1383_v31 = vld [vmem:[#allocation2 + $0x290] sm:$0xff] }
 0x10e   : > { %v891_v39 = vadd.f32 %v3071_v36, %v872_v55  ;;  %v1156_v11 = vmul.f32 %v3527_v27, %v2282_v15  ;;  %v1157_v43 = vmul.f32 %v3528_v57, %v2282_v15  ;;  %v1124_v51 = vadd.f32 %v1108_v13, %v1060_v34  ;;  %v1430_v14 = vld [vmem:[#allocation2 + $0x289] sm:$0xff]  ;;  %v1431_v17 = vld [vmem:[#allocation2 + $0x291] sm:$0xff] }
 0x10f   : > { %v762_v48 = vadd.f32 %v746_v28, %v712_v32  ;;  %v1125_v60 = vadd.f32 %v1109_v46, %v1061_v22  ;;  %v1205_v50 = vmul.f32 %v1189_v49, %v2286_v18  ;;  %v763_v20 = vadd.f32 %v747_v4, %v713_v56 }
 0x110   : > { %v903_v0 = vpack.c.bf16 %v891_v39, %v890_v30  ;;  %v1206_v7 = vmul.f32 %v1190_v3, %v2286_v18  ;;  %v1253_v37 = vmul.f32 %v1237_v8, %v3467_v52  ;;  %v1172_v25 = vadd.f32 %v1156_v11, %v1124_v51  ;;  %v1879_v3 = vld [vmem:[#allocation2 + $0x2c8] sm:$0xff] }
 0x111   : > { %v811_v27 = vadd.f32 %v795_v53, %v762_v48  ;;  %v1173_v6 = vadd.f32 %v1157_v43, %v1125_v60  ;;  %v1254_v57 = vmul.f32 %v1238_v1, %v3467_v52  ;;  %v812_v59 = vadd.f32 %v796_v63, %v763_v20  ;;  %v1880_v43 = vld [vmem:[#allocation2 + $0x2d0] sm:$0xff] }
 0x112   : > { %979 = vmatmul.bf16.gmra.mxu0 %v903_v0  ;;  %v1301_v28 = vmul.f32 %v1285_v12, %v2294_v23  ;;  %v1302_v24 = vmul.f32 %v1286_v61, %v2294_v23  ;;  %v1350_v4 = vmul.f32 %v1334_v29, %v2310_v33  ;;  %v1221_v9 = vadd.f32 %v1205_v50, %v1172_v25  ;;  %v965_v61 = vpop.f32.mrf.mxu0 }
 0x113   : > { %v860_v45 = vadd.f32 %v844_v16, %v811_v27  ;;  %v1222_v55 = vadd.f32 %v1206_v7, %v1173_v6  ;;  %v1351_v53 = vmul.f32 %v1335_v38, %v2310_v33  ;;  %v861_v2 = vadd.f32 %v845_v58, %v812_v59  ;;  %v3544_v38 = vld [vmem:[#allocation47_spill] sm:$0xff] }
 0x114   : > { %v1398_v34 = vmul.f32 %v1382_v62, %v2324_v41  ;;  %v1399_v22 = vmul.f32 %v1383_v31, %v2324_v41  ;;  %v1446_v49 = vmul.f32 %v3013_v44, %v1430_v14  ;;  %v1269_v30 = vadd.f32 %v1253_v37, %v1221_v9  ;;  %v1343_v27 = vld [vmem:[#allocation2 + $0x30f] sm:$0xff]  ;;  %v1881_v9 = vld [vmem:[#allocation2 + $0xe0] sm:$0xff] }
 0x115   : > { %v879_v63 = vmul.f32 %v3059_v35, %v860_v45  ;;  %v1270_v32 = vadd.f32 %v1254_v57, %v1222_v55  ;;  %v1447_v13 = vmul.f32 %v3013_v44, %v1431_v17  ;;  %v880_v46 = vmul.f32 %v3059_v35, %v861_v2 }
 0x116   : > { %v1068_v16 = vmul.f32 %v2916_v21, %v2277_v10  ;;  %v1069_v58 = vmul.f32 %v3535_v40, %v2277_v10  ;;  %v1116_v8 = vmul.f32 %v1879_v3, %v3479_v47  ;;  %v1317_v56 = vadd.f32 %v1301_v28, %v1269_v30 }
 0x117   : > { %v898_v39 = vadd.f32 %v3071_v36, %v879_v63  ;;  %v1318_v11 = vadd.f32 %v1302_v24, %v1270_v32  ;;  %v1117_v1 = vmul.f32 %v1880_v43, %v3479_v47  ;;  %v899_v48 = vadd.f32 %v3071_v36, %v880_v46 }
 0x118   : > { %v1132_v51 = vadd.f32 %v1116_v8, %v1068_v16  ;;  %v1164_v60 = vmul.f32 %v3539_v42, %v2282_v15  ;;  %v1165_v21 = vmul.f32 %v3540_v19, %v2282_v15  ;;  %v1366_v10 = vadd.f32 %v1350_v4, %v1317_v56  ;;  %v1342_v19 = vld [vmem:[#allocation2 + $0x307] sm:$0xff] }
 0x119   : > { %v1367_v40 = vadd.f32 %v1351_v53, %v1318_v11  ;;  %v1133_v50 = vadd.f32 %v1117_v1, %v1069_v58  ;;  %v1213_v12 = vmul.f32 %v3083_v54, %v2286_v18  ;;  %v907_v29 = vpack.c.bf16 %v899_v48, %v898_v39  ;;  %v3545_v54 = vld [vmem:[#allocation25_spill] sm:$0xff]  ;;  %v1438_v4 = vld [vmem:[#allocation2 + $0x309] sm:$0xff]  ;;  %v1439_v53 = vld [vmem:[#allocation2 + $0x311] sm:$0xff] }
 0x11a   : > { %v1180_v0 = vadd.f32 %v1164_v60, %v1132_v51  ;;  %v1214_v47 = vmul.f32 %v3089_v5, %v2286_v18  ;;  %v1261_v20 = vmul.f32 %v3467_v52, %v3542_v26  ;;  %v1414_v7 = vadd.f32 %v1398_v34, %v1366_v10  ;;  %v3546_v18 = vld [vmem:[#allocation49_spill] sm:$0xff] }
 0x11b   : > { %v1415_v42 = vadd.f32 %v1399_v22, %v1367_v40  ;;  %v1181_v37 = vadd.f32 %v1165_v21, %v1133_v50  ;;  %v1262_v15 = vmul.f32 %v3467_v52, %v3544_v38  ;;  %999 = vmatmul.bf16.gmra.mxu2 %v907_v29  ;;  %v1309_v6 = vmul.f32 %v3545_v54, %v2294_v23 }
 0x11c   : > { %v1229_v25 = vadd.f32 %v1213_v12, %v1180_v0  ;;  %v1462_v57 = vadd.f32 %v1446_v49, %v1414_v7  ;;  %v1310_v5 = vmul.f32 %v3546_v18, %v2294_v23  ;;  %v1358_v14 = vmul.f32 %v1342_v19, %v2310_v33 }
 0x11d   : > { %v1463_v62 = vadd.f32 %v1447_v13, %v1415_v42  ;;  %v1230_v31 = vadd.f32 %v1214_v47, %v1181_v37  ;;  %v1359_v59 = vmul.f32 %v1343_v27, %v2310_v33  ;;  %v1005_v17 = vmul.f32 0.33333334, %v965_v61 }
 0x11e   : > { %v1277_v26 = vadd.f32 %v1261_v20, %v1229_v25  ;;  %v1478_v52 = vmul.f32 %v3059_v35, %v1462_v57  ;;  %v1406_v55 = vmul.f32 %v1881_v9, %v2324_v41  ;;  %v1454_v22 = vmul.f32 %v3013_v44, %v1438_v4  ;;  %v967_v41 = vpop.f32.mrf.mxu0 }
 0x11f   : > { %v1479_v28 = vmul.f32 %v3059_v35, %v1463_v62  ;;  %v1278_v24 = vadd.f32 %v1262_v15, %v1230_v31  ;;  %1021 = vst [vmem:[%s3232_s27] sm:$0xff] %v1005_v17  ;;  %v1455_v30 = vmul.f32 %v3013_v44, %v1439_v53  ;;  %v1006_v13 = vmul.f32 0.33333334, %v967_v41 }
 0x120   : > { %v1325_v45 = vadd.f32 %v1309_v6, %v1277_v26  ;;  %v1494_v23 = vadd.f32 %v3071_v36, %v1478_v52 }
 0x121   : > { %v1495_v2 = vadd.f32 %v3071_v36, %v1479_v28  ;;  %v1326_v34 = vadd.f32 %v1310_v5, %v1278_v24  ;;  %1022 = vst [vmem:[%s3232_s27 + $0x8] sm:$0xff] %v1006_v13 }
 0x122   : > { %v1374_v33 = vadd.f32 %v1358_v14, %v1325_v45 }
 0x123   : > { %v1507_v49 = vpack.c.bf16 %v1495_v2, %v1494_v23  ;;  %v1375_v63 = vadd.f32 %v1359_v59, %v1326_v34 }
 0x124   : > { %v1422_v32 = vadd.f32 %v1406_v55, %v1374_v33 }
 0x125   : > { %1535 = vmatmul.bf16.gmra.mxu1 %v1507_v49  ;;  %v1423_v46 = vadd.f32 %v1406_v55, %v1375_v63 }
 0x126   : > { %v1470_v16 = vadd.f32 %v1454_v22, %v1422_v32 }
 0x127   : > { %v1471_v58 = vadd.f32 %v1455_v30, %v1423_v46 }
 0x128   : > { %v1486_v3 = vmul.f32 %v3059_v35, %v1470_v16 }
 0x129   : > { %v1487_v8 = vmul.f32 %v3059_v35, %v1471_v58 }
 0x12a   : > { %v1502_v39 = vadd.f32 %v3071_v36, %v1486_v3 }
 0x12b   : > { %v1503_v56 = vadd.f32 %v3071_v36, %v1487_v8 }
 0x12d   : > { %v1511_v44 = vpack.c.bf16 %v1503_v56, %v1502_v39 }
 0x12f   : > { %1555 = vmatmul.bf16.gmra.mxu3 %v1511_v44 }
 0x133   : > { %v1521_v11 = vpop.f32.mrf.mxu1 }
 0x134   : > { %v985_v43 = vpop.f32.mrf.mxu2  ;;  %v1561_v1 = vmul.f32 0.33333334, %v1521_v11 }
 0x135   : > { %v1013_v48 = vmul.f32 0.33333334, %v985_v43 }
 0x136   : > { %1577 = vst [vmem:[%s3232_s27 + $0x80] sm:$0xff] %v1561_v1 }
 0x137   : > { %1029 = vst [vmem:[%s3232_s27 + $0x40] sm:$0xff] %v1013_v48 }
 0x13b   : > { %v1523_v51 = vpop.f32.mrf.mxu1 }
 0x13c   : > { %v987_v60 = vpop.f32.mrf.mxu2  ;;  %v1562_v35 = vmul.f32 0.33333334, %v1523_v51 }
 0x13d   : > { %v1014_v21 = vmul.f32 0.33333334, %v987_v60  ;;  %v970_v10 = vpop.f32.mrf.mxu0 }
 0x13e   : > { %v1007_v36 = vmul.f32 0.33333334, %v970_v10  ;;  %1578 = vst [vmem:[%s3232_s27 + $0x88] sm:$0xff] %v1562_v35 }
 0x13f   : > { %1030 = vst [vmem:[%s3232_s27 + $0x48] sm:$0xff] %v1014_v21 }
 0x140   : > { %1023 = vst [vmem:[%s3232_s27 + $0x10] sm:$0xff] %v1007_v36 }
 0x142   : > { %v1541_v40 = vpop.f32.mrf.mxu3 }
 0x143   : > { %v1569_v50 = vmul.f32 0.33333334, %v1541_v40 }
 0x145   : > { %1585 = vst [vmem:[%s3232_s27 + $0xc0] sm:$0xff] %v1569_v50  ;;  %v972_v12 = vpop.f32.mrf.mxu0 }
 0x146   : > { %v1008_v29 = vmul.f32 0.33333334, %v972_v12 }
 0x148   : > { %1024 = vst [vmem:[%s3232_s27 + $0x18] sm:$0xff] %v1008_v29 }
 0x14a   : > { %v1543_v61 = vpop.f32.mrf.mxu3 }
 0x14b   : > { %v1570_v0 = vmul.f32 0.33333334, %v1543_v61 }
 0x14d   : > { %1586 = vst [vmem:[%s3232_s27 + $0xc8] sm:$0xff] %v1570_v0 }
 0x152   : > { %v990_v47 = vpop.f32.mrf.mxu2 }
 0x153   : > { %v1015_v20 = vmul.f32 0.33333334, %v990_v47 }
 0x155   : > { %1031 = vst [vmem:[%s3232_s27 + $0x50] sm:$0xff] %v1015_v20  ;;  %v1526_v7 = vpop.f32.mrf.mxu1 }
 0x156   : > { %v1563_v42 = vmul.f32 0.33333334, %v1526_v7 }
 0x158   : > { %1579 = vst [vmem:[%s3232_s27 + $0x90] sm:$0xff] %v1563_v42 }
 0x15a   : > { %v992_v37 = vpop.f32.mrf.mxu2 }
 0x15b   : > { %v1016_v38 = vmul.f32 0.33333334, %v992_v37 }
 0x15d   : > { %1032 = vst [vmem:[%s3232_s27 + $0x58] sm:$0xff] %v1016_v38  ;;  %v1528_v15 = vpop.f32.mrf.mxu1 }
 0x15e   : > { %v1564_v19 = vmul.f32 0.33333334, %v1528_v15 }
 0x160   : > { %1580 = vst [vmem:[%s3232_s27 + $0x98] sm:$0xff] %v1564_v19 }
 0x163   : > { %v1546_v27 = vpop.f32.mrf.mxu3 }
 0x164   : > { %v1571_v25 = vmul.f32 0.33333334, %v1546_v27 }
 0x166   : > { %1587 = vst [vmem:[%s3232_s27 + $0xd0] sm:$0xff] %v1571_v25 }
 0x168   : > { %v975_v54 = vpop.f32.mrf.mxu0 }
 0x169   : > { %v1009_v6 = vmul.f32 0.33333334, %v975_v54 }
 0x16b   : > { %1025 = vst [vmem:[%s3232_s27 + $0x20] sm:$0xff] %v1009_v6  ;;  %v1548_v57 = vpop.f32.mrf.mxu3 }
 0x16c   : > { %v1572_v62 = vmul.f32 0.33333334, %v1548_v57 }
 0x16e   : > { %1588 = vst [vmem:[%s3232_s27 + $0xd8] sm:$0xff] %v1572_v62 }
 0x170   : > { %v977_v31 = vpop.f32.mrf.mxu0 }
 0x171   : > { %v1010_v18 = vmul.f32 0.33333334, %v977_v31 }
 0x173   : > { %1026 = vst [vmem:[%s3232_s27 + $0x28] sm:$0xff] %v1010_v18 }
 0x178   : > { %v995_v5 = vpop.f32.mrf.mxu2 }
 0x179   : > { %v1017_v26 = vmul.f32 0.33333334, %v995_v5 }
 0x17b   : > { %v1531_v14 = vpop.f32.mrf.mxu1  ;;  %1033 = vst [vmem:[%s3232_s27 + $0x60] sm:$0xff] %v1017_v26 }
 0x17c   : > { %v1565_v59 = vmul.f32 0.33333334, %v1531_v14 }
 0x17e   : > { %1581 = vst [vmem:[%s3232_s27 + $0xa0] sm:$0xff] %v1565_v59 }
 0x180   : > { %v997_v52 = vpop.f32.mrf.mxu2 }
 0x181   : > { %v1018_v28 = vmul.f32 0.33333334, %v997_v52 }
 0x183   : > { %v1533_v24 = vpop.f32.mrf.mxu1  ;;  %1034 = vst [vmem:[%s3232_s27 + $0x68] sm:$0xff] %v1018_v28 }
 0x184   : > { %v1566_v4 = vmul.f32 0.33333334, %v1533_v24 }
 0x186   : > { %1582 = vst [vmem:[%s3232_s27 + $0xa8] sm:$0xff] %v1566_v4 }
 0x18b   : > { %v1551_v17 = vpop.f32.mrf.mxu3 }
 0x18c   : > { %v1573_v45 = vmul.f32 0.33333334, %v1551_v17 }
 0x18e   : > { %1589 = vst [vmem:[%s3232_s27 + $0xe0] sm:$0xff] %v1573_v45 }
 0x18f   : > { %v980_v9 = vpop.f32.mrf.mxu0 }
 0x190   : > { %v1011_v55 = vmul.f32 0.33333334, %v980_v9 }
 0x192   : > { %1027 = vst [vmem:[%s3232_s27 + $0x30] sm:$0xff] %v1011_v55 }
 0x193   : > { %v1553_v53 = vpop.f32.mrf.mxu3 }
 0x194   : > { %v1574_v23 = vmul.f32 0.33333334, %v1553_v53 }
 0x196   : > { %1590 = vst [vmem:[%s3232_s27 + $0xe8] sm:$0xff] %v1574_v23 }
 0x197   : > { %v982_v2 = vpop.f32.mrf.mxu0 }
 0x198   : > { %v1012_v34 = vmul.f32 0.33333334, %v982_v2 }
 0x19a   : > { %1028 = vst [vmem:[%s3232_s27 + $0x38] sm:$0xff] %v1012_v34 }
 0x19e   : > { %v1000_v33 = vpop.f32.mrf.mxu2 }
 0x19f   : > { %v1019_v22 = vmul.f32 0.33333334, %v1000_v33 }
 0x1a1   : > { %1035 = vst [vmem:[%s3232_s27 + $0x70] sm:$0xff] %v1019_v22 }
 0x1a2   : > { %v1536_v49 = vpop.f32.mrf.mxu1 }
 0x1a3   : > { %v1567_v63 = vmul.f32 0.33333334, %v1536_v49 }
 0x1a5   : > { %1583 = vst [vmem:[%s3232_s27 + $0xb0] sm:$0xff] %v1567_v63 }
 0x1a6   : > { %v1002_v30 = vpop.f32.mrf.mxu2 }
 0x1a7   : > { %v1020_v41 = vmul.f32 0.33333334, %v1002_v30 }
 0x1a9   : > { %1036 = vst [vmem:[%s3232_s27 + $0x78] sm:$0xff] %v1020_v41 }
 0x1aa   : > { %v1538_v32 = vpop.f32.mrf.mxu1 }
 0x1ab   : > { %v1568_v13 = vmul.f32 0.33333334, %v1538_v32 }
 0x1ad   : > { %1584 = vst [vmem:[%s3232_s27 + $0xb8] sm:$0xff] %v1568_v13 }
 0x1b2   : > { %v1556_v46 = vpop.f32.mrf.mxu3 }
 0x1b3   : > { %v1575_v16 = vmul.f32 0.33333334, %v1556_v46 }
 0x1b5   : > { %1591 = vst [vmem:[%s3232_s27 + $0xf0] sm:$0xff] %v1575_v16 }
 0x1ba   : > { %v1558_v58 = vpop.f32.mrf.mxu3 }
 0x1bb   : > { %v1576_v3 = vmul.f32 0.33333334, %v1558_v58 }
 0x1bd   : > { %1592 = vst [vmem:[%s3232_s27 + $0xf8] sm:$0xff] %v1576_v3 }
 0x1be   : > { %2029 = shalt.err (!%p2026_p10)
}
 0x1bf   : > { %s2086_s26 = smov 128   ;;  %s2087_s23 = smov 8  }
 0x1c0   : > { %1803 = dma.vmem_to_hbm [thread:$0]  (%p2203_p3), %s1607_s16, 4096, %s1609_s17, %s1594_s13, %s2086_s26, %s2086_s26, %s2087_s23  }
 0x1c1 PF: > { %s1623_s27 = sand.u32 1, %s2064_s18   ;;  %p3547_p12 = scmp.ge.s32.totalorder %s2076_s21, 2 }
 0x1c2   : > { %s1624_s28 = scalar_lea.sflag [#allocation5], %s1623_s27 }
 0x1c3   : > { %p1820_p13 = pnand %p3547_p12, %p2153_p6 }
 0x1c5   : > { %p1821_p0 = pneg %p1820_p13 }
 0x1c7   : > { %2059 = dma.done.wait (%p1821_p0), %s1624_s28, 4096  }
 0x1c8   : > { %2061 = vsyncadd (%p1821_p0), %s1624_s28, 4294963200  ;;  %p20_p5 = scmp.ge.s32.totalorder %s2190_s30, 4   ;;  %s3548_s18 = smov %s2068_s19 }
 0x1c9   : > { %s3549_s19 = smov %s2072_s20  ;;  %s3550_s20 = smov %s2199_s9 }
 0x1ca   : > { %s3551_s21 = smov %s2190_s30  ;;  %22 = sbr.rel (!%p20_p5) target bundleno = 7 (0x7), region = 104 }
 0x1cf   :  { %1630 = vsyncpa [#allocation4], 1 }
 0x1d0   :  { %1632 = vsyncpa [#allocation4 + $0x1], 1 }
 0x1d1   :  { %1633 = vsyncpa [#allocation7], 1 }
 0x1d2   :  { %1634 = vsyncpa [#allocation10], 1 }
 0x1d3   :  { %1635 = vsyncpa [#allocation5], 1 }
 0x1d4   :  { %1637 = vsyncpa [#allocation5 + $0x1], 1 }

</bundles_post_ra>
